<compile_context>
chip_gen: v7x
topology: tpu7x:2x2x1
jax: 0.10.0
libtpu: 0.0.40
codegen_flags: <defaults>
</compile_context>

<pallas_src>
import functools

import jax
import jax.numpy as jnp
from jax import lax
from jax.experimental import pallas as pl
from jax.experimental.pallas import tpu as pltpu


def _surfmnet_kernel(c12_ref, c21_ref, ev1_ref, ev2_ref, out_ref):
    # (TB, K, K) functional-map tiles kept in their input dtype so the MXU sees
    # native operands (bf16 stays bf16); accumulation forced to f32.
    c12 = c12_ref[...]
    c21 = c21_ref[...]
    _, K, _ = c12.shape

    # Constant (1, K, K) identity, broadcast over the batch block.  Padded
    # samples (C == 0) therefore contribute exactly K per matmul term; the
    # wrapper removes that statically-known amount.
    row = lax.broadcasted_iota(jnp.int32, (1, K, K), 1)
    col = lax.broadcasted_iota(jnp.int32, (1, K, K), 2)
    eye = (row == col).astype(jnp.float32)

    # --- bijectivity: ||C12 C21 - I||_F^2 + ||C21 C12 - I||_F^2 --------------
    # Compute-and-reduce one (TB,K,K) term at a time to bound live f32 temps.
    m1 = jnp.einsum('bij,bjk->bik', c12, c21,
                    preferred_element_type=jnp.float32) - eye
    bij = jnp.sum(m1 * m1)
    m2 = jnp.einsum('bij,bjk->bik', c21, c12,
                    preferred_element_type=jnp.float32) - eye
    bij = bij + jnp.sum(m2 * m2)

    # --- orthogonality --------------------------------------------------------
    # ||C^T C - I||_F^2 == ||C C^T - I||_F^2 (same singular values), so use the
    # gram form that avoids an explicit lhs transpose feeding the MXU.
    # TODO(synk): verify from the bundle dump that 'bij,bkj->bik' lowers without
    # a per-sample XLU transpose; if not, switch to 'bji,bjk->bik' (identical).
    g1 = jnp.einsum('bij,bkj->bik', c12, c12,
                    preferred_element_type=jnp.float32) - eye
    orth = jnp.sum(g1 * g1)
    g2 = jnp.einsum('bij,bkj->bik', c21, c21,
                    preferred_element_type=jnp.float32) - eye
    orth = orth + jnp.sum(g2 * g2)

    # --- Laplacian commutativity, factored as C * (ev_src_row - ev_dst_col) ---
    # Eigenvalues arrive compact as (TB, K); the row/column broadcasts are tiny
    # in-kernel relayouts (TB*K values) amortized over TB*K*K elementwise work.
    ev1 = ev1_ref[...].astype(jnp.float32)
    ev2 = ev2_ref[...].astype(jnp.float32)
    l1 = c12 * (ev1[:, None, :] - ev2[:, :, None])
    lap = jnp.sum(l1 * l1)
    l2 = c21 * (ev2[:, None, :] - ev1[:, :, None])
    lap = lap + jnp.sum(l2 * l2)

    # Per-block partial sums (no cross-step accumulator -> batch axis parallel).
    out_ref[0, 0] = bij
    out_ref[0, 1] = orth
    out_ref[0, 2] = lap


def _pick_tile_batch(N, K, itemsize):
    """Batch-block size TB, budgeted with the *lane-padded* VMEM footprint.

    Per sample, one C matrix occupies itemsize * roundup(K,8) * roundup(K,128)
    bytes in VMEM.  Budget: 2 C inputs double-buffered (4x) plus ~3 live
    (TB,K,K) f32 intermediates, kept under ~12 MiB so the default scoped VMEM
    fits on every generation (16 MiB v5e, 32 MiB v6e/v7x).  TB is also capped
    so there are >= 4 grid blocks when the batch allows it (megacore sharding
    of the "parallel" axis on v7x), and is always a multiple of 8 (sublane
    alignment for the 2-D eigenvalue tiles).
    """
    lanes = ((K + 127) // 128) * 128
    sub = ((K + 7) // 8) * 8
    per_sample = (4 * itemsize + 3 * 4) * sub * lanes
    budget = 12 * 1024 * 1024
    tb = max(8, (budget // per_sample) // 8 * 8)
    four_way = (((N + 3) // 4 + 7) // 8) * 8          # ceil(N/4) rounded up to x8
    tb = max(8, min(tb, max(8, four_way), 256))
    return int(tb)


@functools.partial(jax.jit,
                   static_argnames=("w_bij", "w_orth", "w_lap", "tile_batch"))
def surfmnet_loss(C12, C21, evals_1, evals_2,
                  w_bij=1.0, w_orth=1.0, w_lap=0.001, tile_batch=None):
    N, K, _ = C12.shape
    itemsize = jnp.dtype(C12.dtype).itemsize
    tb = tile_batch if tile_batch is not None else _pick_tile_batch(N, K, itemsize)
    tb = max(8, ((int(tb) + 7) // 8) * 8)             # sublane-aligned batch block
    num_blocks = (N + tb - 1) // tb
    Np = num_blocks * tb
    n_pad = Np - N
    if n_pad:
        C12 = jnp.pad(C12, ((0, n_pad), (0, 0), (0, 0)))
        C21 = jnp.pad(C21, ((0, n_pad), (0, 0), (0, 0)))
        evals_1 = jnp.pad(evals_1, ((0, n_pad), (0, 0)))
        evals_2 = jnp.pad(evals_2, ((0, n_pad), (0, 0)))

    cost = pl.CostEstimate(
        flops=8 * Np * K ** 3,                        # 4 batched KxK matmuls / sample
        transcendentals=0,
        bytes_accessed=(2 * Np * K * K * itemsize     # C12, C21
                        + 2 * Np * K * itemsize       # eigenvalue vectors (compact)
                        + num_blocks * 3 * 4),        # partial sums
    )

    raw = pl.pallas_call(
        _surfmnet_kernel,
        out_shape=jax.ShapeDtypeStruct((num_blocks, 3), jnp.float32),
        grid_spec=pltpu.PrefetchScalarGridSpec(
            num_scalar_prefetch=0,
            grid=(num_blocks,),
            in_specs=[
                pl.BlockSpec((tb, K, K), lambda n: (n, 0, 0)),
                pl.BlockSpec((tb, K, K), lambda n: (n, 0, 0)),
                pl.BlockSpec((tb, K), lambda n: (n, 0)),
                pl.BlockSpec((tb, K), lambda n: (n, 0)),
            ],
            out_specs=pl.BlockSpec((1, 3), lambda n: (n, 0),
                                   memory_space=pltpu.MemorySpace.SMEM),
        ),
        compiler_params=pltpu.CompilerParams(
            dimension_semantics=("parallel",)),
        cost_estimate=cost,
    )(C12, C21, evals_1, evals_2)

    sums = jnp.sum(raw, axis=0)                       # (3,) raw Frobenius^2 sums
    # Padded samples (C = 0) add exactly K per (matmul - I) term (2 terms each
    # for bij and orth) and nothing to lap; n_pad is static, so correct here.
    bij_sum = sums[0] - 2.0 * K * n_pad
    orth_sum = sums[1] - 2.0 * K * n_pad
    lap_sum = sums[2]

    inv_n = 1.0 / N                                   # SquaredFrobeniusLoss: batch mean
    losses = {}
    if w_bij > 0:
        losses["l_bij"] = w_bij * bij_sum * inv_n
    if w_orth > 0:
        losses["l_orth"] = w_orth * orth_sum * inv_n
    if w_lap > 0:
        losses["l_lap"] = w_lap * lap_sum * inv_n
    return losses


def _reference(C12, C21, ev1, ev2, w_bij=1.0, w_orth=1.0, w_lap=0.001):
    """Pure-JAX reference mirroring the PyTorch module."""
    N, K, _ = C12.shape
    eye = jnp.broadcast_to(jnp.eye(K, dtype=jnp.float32), (N, K, K))
    hp = jax.lax.Precision.HIGHEST

    def crit(a, b):
        return jnp.mean(jnp.sum((a - b) ** 2, axis=(1, 2)))

    bij = crit(jnp.einsum("nij,njk->nik", C12, C21, precision=hp), eye) + crit(
        jnp.einsum("nij,njk->nik", C21, C12, precision=hp), eye)
    orth = crit(jnp.einsum("nji,njk->nik", C12, C12, precision=hp), eye) + crit(
        jnp.einsum("nji,njk->nik", C21, C21, precision=hp), eye)
    lap = crit(C12 * ev1[:, None, :], ev2[:, :, None] * C12) + crit(
        C21 * ev2[:, None, :], ev1[:, :, None] * C21)
    return {"l_bij": w_bij * bij, "l_orth": w_orth * orth, "l_lap": w_lap * lap}


def _check(losses, ref, rtol=2e-3):
    for name in ("l_bij", "l_orth", "l_lap"):
        got = float(losses[name])
        want = float(ref[name])
        assert abs(got - want) <= rtol * max(1.0, abs(want)), (name, got, want)


if __name__ == "__main__":
    key = jax.random.PRNGKey(0)
    k1, k2, k3, k4 = jax.random.split(key, 4)

    def q(x):
        # Round inputs to bf16-representable f32 values so any MXU operand
        # rounding is exact and the check tolerance can stay tight.
        return x.astype(jnp.bfloat16).astype(jnp.float32)

    # Small batch of KxK functional maps.
    N, K = 2, 32
    C12 = q(jax.random.normal(k1, (N, K, K), dtype=jnp.float32))
    C21 = q(jax.random.normal(k2, (N, K, K), dtype=jnp.float32))
    evals_1 = q(jax.random.uniform(k3, (N, K), dtype=jnp.float32))
    evals_2 = q(jax.random.uniform(k4, (N, K), dtype=jnp.float32))

    losses = surfmnet_loss(C12, C21, evals_1, evals_2)
    jax.block_until_ready(losses)
    _check(losses, _reference(C12, C21, evals_1, evals_2))

    # Multi-block grid + ragged batch (padding correction) path.
    N2 = 20
    C12b = q(jax.random.normal(k1, (N2, K, K), dtype=jnp.float32))
    C21b = q(jax.random.normal(k2, (N2, K, K), dtype=jnp.float32))
    ev1b = q(jax.random.uniform(k3, (N2, K), dtype=jnp.float32))
    ev2b = q(jax.random.uniform(k4, (N2, K), dtype=jnp.float32))
    losses_b = surfmnet_loss(C12b, C21b, ev1b, ev2b, tile_batch=16)
    jax.block_until_ready(losses_b)
    _check(losses_b, _reference(C12b, C21b, ev1b, ev2b))

    print("KERNEL_OK")
</pallas_src>

<mosaic_0001>
module attributes {stable_mosaic.version = 11 : i64} {
  func.func @_surfmnet_kernel(%arg0: i32, %arg1: memref<8x32x32xf32, #tpu.memory_space<vmem>>, %arg2: memref<8x32x32xf32, #tpu.memory_space<vmem>>, %arg3: memref<8x32xf32, #tpu.memory_space<vmem>>, %arg4: memref<8x32xf32, #tpu.memory_space<vmem>>, %arg5: memref<1x3xf32, #tpu.memory_space<smem>>) attributes {dimension_semantics = [#tpu.dimension_semantics<parallel>], iteration_bounds = array<i64: 1>, scalar_prefetch = 0 : i64, scratch_operands = 0 : i64, tpu.core_type = #tpu.core_type<tc>, window_params = [{transform_indices = @transform_0, window_bounds = array<i64: 8, 32, 32>}, {transform_indices = @transform_1, window_bounds = array<i64: 8, 32, 32>}, {transform_indices = @transform_2, window_bounds = array<i64: 8, 32>}, {transform_indices = @transform_3, window_bounds = array<i64: 8, 32>}, {transform_indices = @transform_4, window_bounds = array<i64: 1, 3>}]} {
    %c0 = arith.constant 0 : index
    %c0_0 = arith.constant 0 : index
    %c0_1 = arith.constant 0 : index
    %0 = vector.load %arg1[%c0, %c0_0, %c0_1] : memref<8x32x32xf32, #tpu.memory_space<vmem>>, vector<8x32x32xf32>
    %c0_2 = arith.constant 0 : index
    %c0_3 = arith.constant 0 : index
    %c0_4 = arith.constant 0 : index
    %1 = vector.load %arg2[%c0_2, %c0_3, %c0_4] : memref<8x32x32xf32, #tpu.memory_space<vmem>>, vector<8x32x32xf32>
    %2 = tpu.iota {dimensions = array<i32: 1>} : vector<1x32x32xi32>
    %3 = tpu.iota {dimensions = array<i32: 2>} : vector<1x32x32xi32>
    %4 = arith.cmpi eq, %2, %3 : vector<1x32x32xi32>
    %5 = arith.extui %4 : vector<1x32x32xi1> to vector<1x32x32xi32>
    %6 = arith.sitofp %5 : vector<1x32x32xi32> to vector<1x32x32xf32>
    "tpu.trace_start"() <{level = 10 : i32, message = "bij,bjk->bik"}> : () -> ()
    %cst = arith.constant dense<0.000000e+00> : vector<8x32x32xf32>
    %7 = tpu.matmul %0, %1, %cst {dimension_numbers = #tpu.dot_dimension_numbers<[2], [1], [1], [2], [0, 0, 0, 1, 1, 2], [0], [0]>} : vector<8x32x32xf32>, vector<8x32x32xf32>, vector<8x32x32xf32> -> vector<8x32x32xf32>
    "tpu.trace_stop"() : () -> ()
    %8 = vector.broadcast %6 : vector<1x32x32xf32> to vector<8x32x32xf32>
    %9 = arith.subf %7, %8 : vector<8x32x32xf32>
    %10 = arith.mulf %9, %9 : vector<8x32x32xf32>
    %11 = vector.shape_cast %10 : vector<8x32x32xf32> to vector<1x8x32x32xf32>
    %cst_5 = arith.constant dense<0.000000e+00> : vector<1xf32>
    %12 = vector.multi_reduction <add>, %11, %cst_5 [1, 2, 3] : vector<1x8x32x32xf32> to vector<1xf32>
    %13 = vector.shape_cast %12 : vector<1xf32> to vector<1x1x1x1xf32>
    %14 = vector.extract %13[0, 0, 0, 0] : f32 from vector<1x1x1x1xf32>
    "tpu.trace_start"() <{level = 10 : i32, message = "bij,bjk->bik"}> : () -> ()
    %cst_6 = arith.constant dense<0.000000e+00> : vector<8x32x32xf32>
    %15 = tpu.matmul %1, %0, %cst_6 {dimension_numbers = #tpu.dot_dimension_numbers<[2], [1], [1], [2], [0, 0, 0, 1, 1, 2], [0], [0]>} : vector<8x32x32xf32>, vector<8x32x32xf32>, vector<8x32x32xf32> -> vector<8x32x32xf32>
    "tpu.trace_stop"() : () -> ()
    %16 = vector.broadcast %6 : vector<1x32x32xf32> to vector<8x32x32xf32>
    %17 = arith.subf %15, %16 : vector<8x32x32xf32>
    %18 = arith.mulf %17, %17 : vector<8x32x32xf32>
    %19 = vector.shape_cast %18 : vector<8x32x32xf32> to vector<1x8x32x32xf32>
    %cst_7 = arith.constant dense<0.000000e+00> : vector<1xf32>
    %20 = vector.multi_reduction <add>, %19, %cst_7 [1, 2, 3] : vector<1x8x32x32xf32> to vector<1xf32>
    %21 = vector.shape_cast %20 : vector<1xf32> to vector<1x1x1x1xf32>
    %22 = vector.extract %21[0, 0, 0, 0] : f32 from vector<1x1x1x1xf32>
    %23 = arith.addf %14, %22 : f32
    "tpu.trace_start"() <{level = 10 : i32, message = "bij,bkj->bik"}> : () -> ()
    %cst_8 = arith.constant dense<0.000000e+00> : vector<8x32x32xf32>
    %24 = tpu.matmul %0, %0, %cst_8 {dimension_numbers = #tpu.dot_dimension_numbers<[2], [2], [1], [1], [0, 0, 0, 1, 1, 1], [0], [0]>} : vector<8x32x32xf32>, vector<8x32x32xf32>, vector<8x32x32xf32> -> vector<8x32x32xf32>
    "tpu.trace_stop"() : () -> ()
    %25 = vector.broadcast %6 : vector<1x32x32xf32> to vector<8x32x32xf32>
    %26 = arith.subf %24, %25 : vector<8x32x32xf32>
    %27 = arith.mulf %26, %26 : vector<8x32x32xf32>
    %28 = vector.shape_cast %27 : vector<8x32x32xf32> to vector<1x8x32x32xf32>
    %cst_9 = arith.constant dense<0.000000e+00> : vector<1xf32>
    %29 = vector.multi_reduction <add>, %28, %cst_9 [1, 2, 3] : vector<1x8x32x32xf32> to vector<1xf32>
    %30 = vector.shape_cast %29 : vector<1xf32> to vector<1x1x1x1xf32>
    %31 = vector.extract %30[0, 0, 0, 0] : f32 from vector<1x1x1x1xf32>
    "tpu.trace_start"() <{level = 10 : i32, message = "bij,bkj->bik"}> : () -> ()
    %cst_10 = arith.constant dense<0.000000e+00> : vector<8x32x32xf32>
    %32 = tpu.matmul %1, %1, %cst_10 {dimension_numbers = #tpu.dot_dimension_numbers<[2], [2], [1], [1], [0, 0, 0, 1, 1, 1], [0], [0]>} : vector<8x32x32xf32>, vector<8x32x32xf32>, vector<8x32x32xf32> -> vector<8x32x32xf32>
    "tpu.trace_stop"() : () -> ()
    %33 = vector.broadcast %6 : vector<1x32x32xf32> to vector<8x32x32xf32>
    %34 = arith.subf %32, %33 : vector<8x32x32xf32>
    %35 = arith.mulf %34, %34 : vector<8x32x32xf32>
    %36 = vector.shape_cast %35 : vector<8x32x32xf32> to vector<1x8x32x32xf32>
    %cst_11 = arith.constant dense<0.000000e+00> : vector<1xf32>
    %37 = vector.multi_reduction <add>, %36, %cst_11 [1, 2, 3] : vector<1x8x32x32xf32> to vector<1xf32>
    %38 = vector.shape_cast %37 : vector<1xf32> to vector<1x1x1x1xf32>
    %39 = vector.extract %38[0, 0, 0, 0] : f32 from vector<1x1x1x1xf32>
    %40 = arith.addf %31, %39 : f32
    %c0_12 = arith.constant 0 : index
    %c0_13 = arith.constant 0 : index
    %41 = vector.load %arg3[%c0_12, %c0_13] : memref<8x32xf32, #tpu.memory_space<vmem>>, vector<8x32xf32>
    %c0_14 = arith.constant 0 : index
    %c0_15 = arith.constant 0 : index
    %42 = vector.load %arg4[%c0_14, %c0_15] : memref<8x32xf32, #tpu.memory_space<vmem>>, vector<8x32xf32>
    %43 = vector.shape_cast %41 : vector<8x32xf32> to vector<8x1x32xf32>
    %44 = vector.shape_cast %42 : vector<8x32xf32> to vector<8x32x1xf32>
    %45 = vector.broadcast %43 : vector<8x1x32xf32> to vector<8x32x32xf32>
    %46 = vector.broadcast %44 : vector<8x32x1xf32> to vector<8x32x32xf32>
    %47 = arith.subf %45, %46 : vector<8x32x32xf32>
    %48 = arith.mulf %0, %47 : vector<8x32x32xf32>
    %49 = arith.mulf %48, %48 : vector<8x32x32xf32>
    %50 = vector.shape_cast %49 : vector<8x32x32xf32> to vector<1x8x32x32xf32>
    %cst_16 = arith.constant dense<0.000000e+00> : vector<1xf32>
    %51 = vector.multi_reduction <add>, %50, %cst_16 [1, 2, 3] : vector<1x8x32x32xf32> to vector<1xf32>
    %52 = vector.shape_cast %51 : vector<1xf32> to vector<1x1x1x1xf32>
    %53 = vector.extract %52[0, 0, 0, 0] : f32 from vector<1x1x1x1xf32>
    %54 = vector.shape_cast %42 : vector<8x32xf32> to vector<8x1x32xf32>
    %55 = vector.shape_cast %41 : vector<8x32xf32> to vector<8x32x1xf32>
    %56 = vector.broadcast %54 : vector<8x1x32xf32> to vector<8x32x32xf32>
    %57 = vector.broadcast %55 : vector<8x32x1xf32> to vector<8x32x32xf32>
    %58 = arith.subf %56, %57 : vector<8x32x32xf32>
    %59 = arith.mulf %1, %58 : vector<8x32x32xf32>
    %60 = arith.mulf %59, %59 : vector<8x32x32xf32>
    %61 = vector.shape_cast %60 : vector<8x32x32xf32> to vector<1x8x32x32xf32>
    %cst_17 = arith.constant dense<0.000000e+00> : vector<1xf32>
    %62 = vector.multi_reduction <add>, %61, %cst_17 [1, 2, 3] : vector<1x8x32x32xf32> to vector<1xf32>
    %63 = vector.shape_cast %62 : vector<1xf32> to vector<1x1x1x1xf32>
    %64 = vector.extract %63[0, 0, 0, 0] : f32 from vector<1x1x1x1xf32>
    %65 = arith.addf %53, %64 : f32
    %c0_18 = arith.constant 0 : index
    %c0_19 = arith.constant 0 : index
    %66 = memref.load %arg5[%c0_18, %c0_19] : memref<1x3xf32, #tpu.memory_space<smem>>
    memref.store %23, %arg5[%c0_18, %c0_19] : memref<1x3xf32, #tpu.memory_space<smem>>
    %c0_20 = arith.constant 0 : index
    %c1 = arith.constant 1 : index
    %67 = memref.load %arg5[%c0_20, %c1] : memref<1x3xf32, #tpu.memory_space<smem>>
    memref.store %40, %arg5[%c0_20, %c1] : memref<1x3xf32, #tpu.memory_space<smem>>
    %c0_21 = arith.constant 0 : index
    %c2 = arith.constant 2 : index
    %68 = memref.load %arg5[%c0_21, %c2] : memref<1x3xf32, #tpu.memory_space<smem>>
    memref.store %65, %arg5[%c0_21, %c2] : memref<1x3xf32, #tpu.memory_space<smem>>
    return
  }
  func.func @transform_0(%arg0: i32) -> (i32, i32, i32) {
    %c0_i32 = arith.constant 0 : i32
    %c0_i32_0 = arith.constant 0 : i32
    %c0_i32_1 = arith.constant 0 : i32
    return %arg0, %c0_i32, %c0_i32_0 : i32, i32, i32
  }
  func.func @transform_1(%arg0: i32) -> (i32, i32, i32) {
    %c0_i32 = arith.constant 0 : i32
    %c0_i32_0 = arith.constant 0 : i32
    %c0_i32_1 = arith.constant 0 : i32
    return %arg0, %c0_i32, %c0_i32_0 : i32, i32, i32
  }
  func.func @transform_2(%arg0: i32) -> (i32, i32) {
    %c0_i32 = arith.constant 0 : i32
    %c0_i32_0 = arith.constant 0 : i32
    return %arg0, %c0_i32 : i32, i32
  }
  func.func @transform_3(%arg0: i32) -> (i32, i32) {
    %c0_i32 = arith.constant 0 : i32
    %c0_i32_0 = arith.constant 0 : i32
    return %arg0, %c0_i32 : i32, i32
  }
  func.func @transform_4(%arg0: i32) -> (i32, i32) {
    %c0_i32 = arith.constant 0 : i32
    %c0_i32_0 = arith.constant 0 : i32
    return %arg0, %c0_i32 : i32, i32
  }
}

</mosaic_0001>

<bundles_post_ra>
// kernel: surfmnet_loss.1
= control target key start
LH: loop header
LB: loop body
LE: loop exit
PB: predicated region body
PF: predicated region fallthrough
CT: control target
= control target key end

     0   :  { %vm101_vm0 = vcmask 261120   ;;  %s7776_s0 = inlined_call_operand.vmem [shape: f32[8,32,32], index: 0, kind: input, shape index: {}]   ;;  %s7777_s1 = inlined_call_operand.vmem [shape: f32[8,32,32], index: 1, kind: input, shape index: {}]   ;;  %s7778_s2 = inlined_call_operand.vmem [shape: f32[8,32], index: 2, kind: input, shape index: {}]   ;;  %s7779_s3 = inlined_call_operand.vmem [shape: f32[8,32], index: 3, kind: input, shape index: {}]   ;;  %s7780_s4 = inlined_call_operand.vmem [shape: f32[1,3], index: 4, kind: output, shape index: {}]  }
   0x1   :  { %v5743_v0 = vld [vmem:[%s7777_s1] sm:$0xff]  ;;  %v5748_v1 = vld [vmem:[%s7777_s1 + $0x8] sm:$0xff]  ;;  %v5753_v2 = vld [vmem:[%s7777_s1 + $0x10] sm:$0xff] }
   0x2   :  { %7843 = vst [vmem:[#allocation5_spill] sm:$0xff] %v5743_v0  ;;  %7844 = vst [vmem:[#allocation6_spill] sm:$0xff] %v5753_v2  ;;  %v5757_v3 = vpack.c.bf16 %v5748_v1, %v5743_v0  ;;  %v5762_v4 = vld [vmem:[%s7777_s1 + $0x18] sm:$0xff]  ;;  %v5767_v5 = vld [vmem:[%s7776_s0] sm:$0xff] }
   0x3   :  { %7846 = vst [vmem:[#allocation8_spill] sm:$0xff] %v5767_v5  ;;  %v5772_v6 = vld [vmem:[%s7777_s1 + $0x20] sm:$0xff]  ;;  %v5776_v7 = vpack.c.bf16 %v5762_v4, %v5753_v2  ;;  %4864 = vmatprep.mubr.msk.f32.mxu0 %vm101_vm0, %v5767_v5  ;;  %v5783_v8 = vld [vmem:[%s7777_s1 + $0x28] sm:$0xff]  ;;  %v5803_v12 = vld [vmem:[%s7777_s1 + $0x30] sm:$0xff] }
   0x4   :  { %7845 = vst [vmem:[#allocation7_spill] sm:$0xff] %v5757_v3  ;;  %7847 = vst [vmem:[#allocation9_spill] sm:$0xff] %v5772_v6  ;;  %v5788_v9 = vld [vmem:[%s7777_s1 + $0x40] sm:$0xff]  ;;  %5305 = vmatprep.subr.bf16.mxu0 %v5757_v3  ;;  %v5793_v10 = vpack.c.bf16 %v5783_v8, %v5772_v6  ;;  %v5798_v11 = vld [vmem:[%s7777_s1 + $0x48] sm:$0xff] }
   0x5   :  { %7848 = vst [vmem:[#allocation10_spill] sm:$0xff] %v5776_v7  ;;  %7849 = vst [vmem:[#allocation11_spill] sm:$0xff] %v5788_v9  ;;  %5307 = vmatpush3.bf16.msra.mxu0 %v5757_v3  ;;  %v5809_v13 = vld [vmem:[%s7777_s1 + $0x38] sm:$0xff]  ;;  %v5815_v14 = vpack.c.bf16 %v5798_v11, %v5788_v9  ;;  %v5824_v16 = vld [vmem:[%s7777_s1 + $0x50] sm:$0xff] }
   0x6   :  { %7850 = vst [vmem:[#allocation12_spill] sm:$0xff] %v5793_v10  ;;  %7851 = vst [vmem:[#allocation13_spill] sm:$0xff] %v5798_v11  ;;  %5309 = vmatprep.subr.bf16.mxu0 %v5776_v7  ;;  %5313 = vmatprep.subr.bf16.mxu1 %v5793_v10  ;;  %v5819_v15 = vpack.c.bf16 %v5809_v13, %v5803_v12  ;;  %v5829_v17 = vld [vmem:[%s7776_s0 + $0x20] sm:$0xff]  ;;  %v5835_v18 = vld [vmem:[%s7777_s1 + $0x58] sm:$0xff] }
   0x7   :  { %7852 = vst [vmem:[#allocation14_spill] sm:$0xff] %v5803_v12  ;;  %7853 = vst [vmem:[#allocation15_spill] sm:$0xff] %v5809_v13  ;;  %5315 = vmatpush3.bf16.msra.mxu1 %v5793_v10  ;;  %4878 = vmatprep.mubr.msk.f32.mxu1 %vm101_vm0, %v5829_v17  ;;  %v5842_v19 = vld [vmem:[%s7777_s1 + $0x60] sm:$0xff]  ;;  %v5847_v20 = vld [vmem:[%s7777_s1 + $0x68] sm:$0xff]  ;;  %v5873_v25 = vpack.c.bf16 %v5835_v18, %v5824_v16 }
   0x8   :  { %7854 = vst [vmem:[#allocation16_spill] sm:$0xff] %v5815_v14  ;;  %7855 = vst [vmem:[#allocation17_spill] sm:$0xff] %v5819_v15  ;;  %5317 = vmatprep.subr.bf16.mxu1 %v5819_v15  ;;  %v5852_v21 = vpack.c.bf16 %v5847_v20, %v5842_v19  ;;  %v5858_v22 = vld [vmem:[%s7776_s0 + $0x8] sm:$0xff]  ;;  %v5863_v23 = vld [vmem:[%s7777_s1 + $0x70] sm:$0xff] }
   0x9   :  { %7856 = vst [vmem:[#allocation18_spill] sm:$0xff] %v5824_v16  ;;  %7857 = vst [vmem:[#allocation19_spill] sm:$0xff] %v5835_v18  ;;  %5311 = vmatpush3.bf16.msra.mxu0 %v5776_v7  ;;  %v5869_v24 = vld [vmem:[%s7776_s0 + $0x10] sm:$0xff]  ;;  %v5878_v26 = vld [vmem:[%s7777_s1 + $0x78] sm:$0xff] }
   0xa   :  { %7858 = vst [vmem:[#allocation20_spill] sm:$0xff] %v5847_v20  ;;  %7859 = vst [vmem:[#allocation21_spill] sm:$0xff] %v5852_v21  ;;  %5321 = vmatprep.subr.bf16.mxu0 %v5815_v14  ;;  %v5884_v27 = vld [vmem:[%s7776_s0 + $0x28] sm:$0xff]  ;;  %v5889_v28 = vld [vmem:[%s7777_s1 + $0x80] sm:$0xff]  ;;  %v5906_v31 = vpack.c.bf16 %v5878_v26, %v5863_v23 }
   0xb   :  { %7860 = vst [vmem:[#allocation22_spill] sm:$0xff] %v5858_v22  ;;  %7861 = vst [vmem:[#allocation23_spill] sm:$0xff] %v5869_v24  ;;  %5319 = vmatpush3.bf16.msra.mxu1 %v5819_v15  ;;  %v5894_v29 = vld [vmem:[%s7777_s1 + $0x88] sm:$0xff]  ;;  %v5902_v30 = vld [vmem:[%s7776_s0 + $0x30] sm:$0xff] }
   0xc   :  { %7862 = vst [vmem:[#allocation24_spill] sm:$0xff] %v5873_v25  ;;  %7863 = vst [vmem:[#allocation25_spill] sm:$0xff] %v5878_v26  ;;  %4865 = vmatmul.mubr.msk.f32.vlgmr.msra.gmra.mrb[0].mxu0 %vm101_vm0, %v5858_v22  ;;  %5329 = vmatprep.subr.bf16.mxu1 %v5852_v21  ;;  %v5914_v32 = vld [vmem:[%s7776_s0 + $0x18] sm:$0xff]  ;;  %v5919_v33 = vld [vmem:[%s7777_s1 + $0xa0] sm:$0xff]  ;;  %v5936_v36 = vpack.c.bf16 %v5894_v29, %v5889_v28 }
   0xd   :  { %7864 = vst [vmem:[#allocation26_spill] sm:$0xff] %v5884_v27  ;;  %7865 = vst [vmem:[#allocation27_spill] sm:$0xff] %v5894_v29  ;;  %5323 = vmatpush3.bf16.msra.mxu0 %v5815_v14  ;;  %4867 = vmatprep.mubr.msk.f32.mxu0 %vm101_vm0, %v5869_v24  ;;  %v5924_v34 = vld [vmem:[%s7777_s1 + $0xa8] sm:$0xff]  ;;  %v5930_v35 = vld [vmem:[%s7776_s0 + $0x40] sm:$0xff] }
   0xe   :  { %7866 = vst [vmem:[#allocation28_spill] sm:$0xff] %v5902_v30  ;;  %7867 = vst [vmem:[#allocation29_spill] sm:$0xff] %v5906_v31  ;;  %5325 = vmatprep.subr.bf16.mxu0 %v5873_v25  ;;  %4879 = vmatmul.mubr.msk.f32.vlgmr.msra.gmra.mrb[0].mxu1 %vm101_vm0, %v5884_v27  ;;  %v5944_v37 = vld [vmem:[%s7776_s0 + $0x38] sm:$0xff]  ;;  %v5949_v38 = vld [vmem:[%s7777_s1 + $0x90] sm:$0xff]  ;;  %v5966_v41 = vpack.c.bf16 %v5924_v34, %v5919_v33 }
   0xf   :  { %7868 = vst [vmem:[#allocation30_spill] sm:$0xff] %v5914_v32  ;;  %7869 = vst [vmem:[#allocation31_spill] sm:$0xff] %v5919_v33  ;;  %5331 = vmatpush3.bf16.msra.mxu1 %v5852_v21  ;;  %4881 = vmatprep.mubr.msk.f32.mxu1 %vm101_vm0, %v5902_v30  ;;  %v5954_v39 = vld [vmem:[%s7777_s1 + $0x98] sm:$0xff]  ;;  %v5962_v40 = vld [vmem:[%s7776_s0 + $0x60] sm:$0xff] }
  0x10   :  { %7870 = vst [vmem:[#allocation32_spill] sm:$0xff] %v5924_v34  ;;  %7871 = vst [vmem:[#allocation33_spill] sm:$0xff] %v5936_v36  ;;  %4868 = vmatmul.mubr.msk.f32.gmra.mrb[2].mxu0 %vm101_vm0, %v5914_v32  ;;  %5333 = vmatprep.subr.bf16.mxu1 %v5906_v31  ;;  %v5974_v42 = vld [vmem:[%s7776_s0 + $0x48] sm:$0xff]  ;;  %v5979_v43 = vld [vmem:[%s7777_s1 + $0xb0] sm:$0xff]  ;;  %v5996_v46 = vpack.c.bf16 %v5954_v39, %v5949_v38 }
  0x11   :  { %7872 = vst [vmem:[#allocation34_spill] sm:$0xff] %v5944_v37  ;;  %7873 = vst [vmem:[#allocation35_spill] sm:$0xff] %v5949_v38  ;;  %5327 = vmatpush3.bf16.msra.mxu0 %v5873_v25  ;;  %4892 = vmatprep.mubr.msk.f32.mxu0 %vm101_vm0, %v5930_v35  ;;  %v5984_v44 = vld [vmem:[%s7777_s1 + $0xb8] sm:$0xff]  ;;  %v5990_v45 = vld [vmem:[%s7776_s0 + $0x50] sm:$0xff] }
  0x12   :  { %7874 = vst [vmem:[#allocation36_spill] sm:$0xff] %v5954_v39  ;;  %7875 = vst [vmem:[#allocation37_spill] sm:$0xff] %v5966_v41  ;;  %5337 = vmatprep.subr.bf16.mxu0 %v5936_v36  ;;  %4882 = vmatmul.mubr.msk.f32.gmra.mrb[2].mxu1 %vm101_vm0, %v5944_v37  ;;  %v6004_v47 = vld [vmem:[%s7776_s0 + $0x68] sm:$0xff]  ;;  %v6009_v48 = vld [vmem:[%s7777_s1 + $0xc0] sm:$0xff]  ;;  %v6026_v51 = vpack.c.bf16 %v5984_v44, %v5979_v43 }
  0x13   :  { %7876 = vst [vmem:[#allocation38_spill] sm:$0xff] %v5974_v42  ;;  %7877 = vst [vmem:[#allocation39_spill] sm:$0xff] %v5996_v46  ;;  %5335 = vmatpush3.bf16.msra.mxu1 %v5906_v31  ;;  %4906 = vmatprep.mubr.msk.f32.mxu1 %vm101_vm0, %v5962_v40  ;;  %v6014_v49 = vld [vmem:[%s7777_s1 + $0xc8] sm:$0xff]  ;;  %v6022_v50 = vld [vmem:[%s7776_s0 + $0x70] sm:$0xff] }
  0x14   :  { %4893 = vmatmul.mubr.msk.f32.vlgmr.msra.gmra.mrb[4].mxu0 %vm101_vm0, %v5974_v42  ;;  %5345 = vmatprep.subr.bf16.mxu1 %v5966_v41  ;;  %7878 = vst [vmem:[#allocation40_spill] sm:$0xff] %v6026_v51  ;;  %v6034_v52 = vld [vmem:[%s7776_s0 + $0x58] sm:$0xff]  ;;  %v6039_v53 = vld [vmem:[%s7777_s1 + $0xe0] sm:$0xff]  ;;  %v6044_v54 = vld [vmem:[%s7777_s1 + $0xe8] sm:$0xff]  ;;  %v6056_v56 = vpack.c.bf16 %v6014_v49, %v6009_v48 }
  0x15   :  { %5339 = vmatpush3.bf16.msra.mxu0 %v5936_v36  ;;  %4895 = vmatprep.mubr.msk.f32.mxu0 %vm101_vm0, %v5990_v45  ;;  %v6050_v55 = vld [vmem:[%s7776_s0 + $0x80] sm:$0xff]  ;;  %v6061_v57 = vld [vmem:[%s7776_s0 + $0x78] sm:$0xff]  ;;  %v6069_v58 = vld [vmem:[%s7777_s1 + $0xd0] sm:$0xff] }
  0x16   :  { %5341 = vmatprep.subr.bf16.mxu0 %v5996_v46  ;;  %4907 = vmatmul.mubr.msk.f32.vlgmr.msra.gmra.mrb[4].mxu1 %vm101_vm0, %v6004_v47  ;;  %7879 = vst [vmem:[#allocation41_spill] sm:$0xff] %v6056_v56  ;;  %v6074_v59 = vld [vmem:[%s7777_s1 + $0xd8] sm:$0xff] }
  0x17   :  { %5347 = vmatpush3.bf16.msra.mxu1 %v5966_v41  ;;  %4909 = vmatprep.mubr.msk.f32.mxu1 %vm101_vm0, %v6022_v50 }
  0x18   :  { %9 = vsyncpa [#allocation3], 0  ;;  %4896 = vmatmul.mubr.msk.f32.gmra.mrb[6].mxu0 %vm101_vm0, %v6034_v52  ;;  %5349 = vmatprep.subr.bf16.mxu1 %v6026_v51  ;;  %v6082_v60 = vld [vmem:[%s7776_s0 + $0xa0] sm:$0xff]  ;;  %v6086_v61 = vpack.c.bf16 %v6044_v54, %v6039_v53  ;;  %v6094_v62 = vld [vmem:[%s7776_s0 + $0x88] sm:$0xff]  ;;  %v6116_v36 = vpack.c.bf16 %v6074_v59, %v6069_v58  ;;  %s4395_s22 = sshll.u32 %s7780_s4, 4  ;;  %s4396_s22 = int_to_ptr.vmem [resolvable:$true] %s4395_s22 }
  0x19   :  { %5343 = vmatpush3.bf16.msra.mxu0 %v5996_v46  ;;  %4920 = vmatprep.mubr.msk.f32.mxu0 %vm101_vm0, %v6050_v55  ;;  %v6099_v63 = vld [vmem:[%s7777_s1 + $0xf0] sm:$0xff]  ;;  %v6104_v41 = vld [vmem:[%s7777_s1 + $0xf8] sm:$0xff]  ;;  %v6124_v31 = vld [vmem:[%s7776_s0 + $0xa8] sm:$0xff]  ;;  %s5698_s26 = scalar_lea.vmem %s4396_s22, 16  ;;  %p5703_p1 = scmp.lt.s32.totalorder %s4396_s22, %s4396_s22 }
  0x1a   :  { %7880 = vst [vmem:[#allocation42_spill] sm:$0xff] %v6086_v61  ;;  %5353 = vmatprep.subr.bf16.mxu0 %v6056_v56  ;;  %v6110_v46 = vld [vmem:[%s7776_s0 + $0x90] sm:$0xff]  ;;  %4910 = vmatmul.mubr.msk.f32.gmra.mrb[6].mxu1 %vm101_vm0, %v6061_v57  ;;  %7881 = vst [vmem:[#allocation43_spill] sm:$0xff] %v6116_v36  ;;  %v6144_v21 = vld [vmem:[%s7776_s0 + $0x98] sm:$0xff]  ;;  %p5699_p0 = scmp.ne.s32.totalorder %s4396_s22, %s5698_s26  ;;  %p5704_p2 = scmp.lt.s32.totalorder %s5698_s26, %s5698_s26 }
  0x1b   :  { %5351 = vmatpush3.bf16.msra.mxu1 %v6026_v51  ;;  %4934 = vmatprep.mubr.msk.f32.mxu1 %vm101_vm0, %v6082_v60  ;;  %v6132_v25 = vld [vmem:[%s7776_s0 + $0xb0] sm:$0xff]  ;;  %v6136_v51 = vpack.c.bf16 %v6104_v41, %v6099_v63  ;;  %v6150_v14 = vld [vmem:[%s7776_s0 + $0xc0] sm:$0xff]  ;;  %v6164_v15 = vld [vmem:[%s7776_s0 + $0xb8] sm:$0xff] }
  0x1c   :  { %4921 = vmatmul.mubr.msk.f32.vlgmr.msra.gmra.mrb[8].mxu0 %vm101_vm0, %v6094_v62  ;;  %5361 = vmatprep.subr.bf16.mxu1 %v6086_v61  ;;  %v6172_v7 = vld [vmem:[%s7776_s0 + $0xe0] sm:$0xff]  ;;  %v6184_v10 = vld [vmem:[%s7776_s0 + $0xc8] sm:$0xff]  ;;  %v6190_v3 = vld [vmem:[%s7776_s0 + $0xd0] sm:$0xff]  ;;  %p5705_p3 = por %p5704_p2, %p5703_p1 }
  0x1d   :  { %7882 = vst [vmem:[#allocation44_spill] sm:$0xff] %v6136_v51  ;;  %5355 = vmatpush3.bf16.msra.mxu0 %v6056_v56  ;;  %4923 = vmatprep.mubr.msk.f32.mxu0 %vm101_vm0, %v6110_v46  ;;  %v6156_v56 = vpack.c.bf16 %v5858_v22, %v5767_v5  ;;  %v6231_v22 = vpack.c.bf16 %v5974_v42, %v5930_v35  ;;  %vm6368_vm1 = vmpackc.low %vm101_vm0, %vm101_vm0 }
  0x1e   :  { %5357 = vmatprep.subr.bf16.mxu0 %v6116_v36  ;;  %4935 = vmatmul.mubr.msk.f32.vlgmr.msra.gmra.mrb[8].mxu1 %vm101_vm0, %v6124_v31  ;;  %v6256_v42 = vpack.c.bf16 %v6034_v52, %v5990_v45  ;;  %p5706_p4 = pnand %p5705_p3, %p5699_p0 }
  0x1f   :  { %5363 = vmatpush3.bf16.msra.mxu1 %v6086_v61  ;;  %4937 = vmatprep.mubr.msk.f32.mxu1 %vm101_vm0, %v6132_v25  ;;  %v6176_v61 = vpack.c.bf16 %v5884_v27, %v5829_v17  ;;  %v6204_v27 = vld [vmem:[%s7776_s0 + $0xe8] sm:$0xff] }
  0x20   :  { %4924 = vmatmul.mubr.msk.f32.gmra.mrb[10].mxu0 %vm101_vm0, %v6144_v21  ;;  %5365 = vmatprep.subr.bf16.mxu1 %v6136_v51 }
  0x21   :  { %5359 = vmatpush3.bf16.msra.mxu0 %v6116_v36  ;;  %4948 = vmatprep.mubr.msk.f32.mxu0 %vm101_vm0, %v6150_v14  ;;  %v6196_v36 = vpack.c.bf16 %v5914_v32, %v5869_v24  ;;  %v6212_v32 = vld [vmem:[%s7776_s0 + $0xf0] sm:$0xff]  ;;  %v6224_v24 = vld [vmem:[%s7776_s0 + $0xd8] sm:$0xff] }
  0x22   :  { %5369 = vmatprep.subr.bf16.mxu0 %v6156_v56  ;;  %4938 = vmatmul.mubr.msk.f32.gmra.mrb[10].mxu1 %vm101_vm0, %v6164_v15 }
  0x23   :  { %5367 = vmatpush3.bf16.msra.mxu1 %v6136_v51  ;;  %4962 = vmatprep.mubr.msk.f32.mxu1 %vm101_vm0, %v6172_v7  ;;  %v6216_v51 = vpack.c.bf16 %v5944_v37, %v5902_v30  ;;  %v6239_v37 = vld [vmem:[%s7776_s0 + $0xf8] sm:$0xff]  ;;  %v6246_v30 = vpack.c.bf16 %v6004_v47, %v5962_v40 }
  0x24   :  { %4949 = vmatmul.mubr.msk.f32.vlgmr.msra.gmra.mrb[12].mxu0 %vm101_vm0, %v6184_v10  ;;  %5377 = vmatprep.subr.bf16.mxu1 %v6176_v61 }
  0x25   :  { %5371 = vmatpush3.bf16.msra.mxu0 %v6156_v56  ;;  %4951 = vmatprep.mubr.msk.f32.mxu0 %vm101_vm0, %v6190_v3 }
  0x26   :  { %5373 = vmatprep.subr.bf16.mxu0 %v6196_v36  ;;  %4963 = vmatmul.mubr.msk.f32.vlgmr.msra.gmra.mrb[12].mxu1 %vm101_vm0, %v6204_v27 }
  0x27   :  { %5379 = vmatpush3.bf16.msra.mxu1 %v6176_v61  ;;  %4965 = vmatprep.mubr.msk.f32.mxu1 %vm101_vm0, %v6212_v32 }
  0x28   :  { %4952 = vmatmul.mubr.msk.f32.gmra.mrb[14].mxu0 %vm101_vm0, %v6224_v24  ;;  %5381 = vmatprep.subr.bf16.mxu1 %v6216_v51 }
  0x29   :  { %5375 = vmatpush3.bf16.msra.mxu0 %v6196_v36  ;;  %4976 = vmatprep.mubr.msk.f32.mxu0 %vm101_vm0, %v5743_v0  ;;  %v6266_v0 = vpack.c.bf16 %v6061_v57, %v6022_v50 }
  0x2a   :  { %5385 = vmatprep.subr.bf16.mxu0 %v6231_v22  ;;  %4966 = vmatmul.mubr.msk.f32.gmra.mrb[14].mxu1 %vm101_vm0, %v6239_v37 }
  0x2b   :  { %5383 = vmatpush3.bf16.msra.mxu1 %v6216_v51  ;;  %4990 = vmatprep.mubr.msk.f32.mxu1 %vm101_vm0, %v5772_v6  ;;  %v6276_v6 = vpack.c.bf16 %v6094_v62, %v6050_v55 }
  0x2c   :  { %4977 = vmatmul.mubr.msk.f32.vlgmr.msra.gmra.mrb[16].mxu0 %vm101_vm0, %v5748_v1  ;;  %5393 = vmatprep.subr.bf16.mxu1 %v6246_v30 }
  0x2d   :  { %5387 = vmatpush3.bf16.msra.mxu0 %v6231_v22  ;;  %4979 = vmatprep.mubr.msk.f32.mxu0 %vm101_vm0, %v5753_v2  ;;  %v6286_v2 = vpack.c.bf16 %v6124_v31, %v6082_v60 }
  0x2e   :  { %5389 = vmatprep.subr.bf16.mxu0 %v6256_v42  ;;  %4991 = vmatmul.mubr.msk.f32.vlgmr.msra.gmra.mrb[16].mxu1 %vm101_vm0, %v5783_v8 }
  0x2f   :  { %5395 = vmatpush3.bf16.msra.mxu1 %v6246_v30  ;;  %4993 = vmatprep.mubr.msk.f32.mxu1 %vm101_vm0, %v5803_v12  ;;  %v6296_v12 = vpack.c.bf16 %v6144_v21, %v6110_v46 }
  0x30   :  { %4980 = vmatmul.mubr.msk.f32.gmra.mrb[18].mxu0 %vm101_vm0, %v5762_v4  ;;  %5397 = vmatprep.subr.bf16.mxu1 %v6266_v0 }
  0x31   :  { %5391 = vmatpush3.bf16.msra.mxu0 %v6256_v42  ;;  %5004 = vmatprep.mubr.msk.f32.mxu0 %vm101_vm0, %v5788_v9  ;;  %v6306_v9 = vpack.c.bf16 %v6164_v15, %v6132_v25 }
  0x32   :  { %5401 = vmatprep.subr.bf16.mxu0 %v6276_v6  ;;  %4994 = vmatmul.mubr.msk.f32.gmra.mrb[18].mxu1 %vm101_vm0, %v5809_v13  ;;  %v6326_v13 = vpack.c.bf16 %v6204_v27, %v6172_v7 }
  0x33   :  { %5399 = vmatpush3.bf16.msra.mxu1 %v6266_v0  ;;  %5018 = vmatprep.mubr.msk.f32.mxu1 %vm101_vm0, %v5842_v19 }
  0x34   :  { %5005 = vmatmul.mubr.msk.f32.vlgmr.msra.gmra.mrb[20].mxu0 %vm101_vm0, %v5798_v11  ;;  %5409 = vmatprep.subr.bf16.mxu1 %v6286_v2  ;;  %v6316_v11 = vpack.c.bf16 %v6184_v10, %v6150_v14 }
  0x35   :  { %5403 = vmatpush3.bf16.msra.mxu0 %v6276_v6  ;;  %5007 = vmatprep.mubr.msk.f32.mxu0 %vm101_vm0, %v5824_v16 }
  0x36   :  { %5405 = vmatprep.subr.bf16.mxu0 %v6296_v12  ;;  %5019 = vmatmul.mubr.msk.f32.vlgmr.msra.gmra.mrb[20].mxu1 %vm101_vm0, %v5847_v20  ;;  %v7883_v20 = vlaneseq }
  0x37   :  { %5411 = vmatpush3.bf16.msra.mxu1 %v6286_v2  ;;  %5021 = vmatprep.mubr.msk.f32.mxu1 %vm101_vm0, %v5863_v23 }
  0x38   :  { %5008 = vmatmul.mubr.msk.f32.gmra.mrb[22].mxu0 %vm101_vm0, %v5835_v18  ;;  %5413 = vmatprep.subr.bf16.mxu1 %v6306_v9  ;;  %v6332_v16 = vshrl.u32 %v7883_v20, 7  ;;  %v6339_v18 = vpack.c.bf16 %v6224_v24, %v6190_v3  ;;  %v6349_v20 = vpack.c.bf16 %v6239_v37, %v6212_v32 }
  0x39   :  { %5407 = vmatpush3.bf16.msra.mxu0 %v6296_v12  ;;  %5032 = vmatprep.mubr.msk.f32.mxu0 %vm101_vm0, %v5889_v28 }
  0x3a   :  { %5417 = vmatprep.subr.bf16.mxu0 %v6316_v11  ;;  %5022 = vmatmul.mubr.msk.f32.gmra.mrb[22].mxu1 %vm101_vm0, %v5878_v26  ;;  %v6355_v26 = vsub.s32 0, %v6332_v16 }
  0x3b   :  { %5415 = vmatpush3.bf16.msra.mxu1 %v6306_v9  ;;  %5046 = vmatprep.mubr.msk.f32.mxu1 %vm101_vm0, %v5919_v33 }
  0x3c   :  { %5033 = vmatmul.mubr.msk.f32.vlgmr.msra.gmra.mrb[24].mxu0 %vm101_vm0, %v5894_v29  ;;  %5425 = vmatprep.subr.bf16.mxu1 %v6326_v13  ;;  %v6363_v29 = vld [vmem:[%s7779_s3] sm:$0xff] }
  0x3d   :  { %5419 = vmatpush3.bf16.msra.mxu0 %v6316_v11  ;;  %5035 = vmatprep.mubr.msk.f32.mxu0 %vm101_vm0, %v5949_v38  ;;  %v3615_v38 = vrot.slane %v6363_v29, %v6355_v26 }
  0x3e   :  { %5421 = vmatprep.subr.bf16.mxu0 %v6339_v18  ;;  %5047 = vmatmul.mubr.msk.f32.vlgmr.msra.gmra.mrb[24].mxu1 %vm101_vm0, %v5924_v34  ;;  %v6377_v34 = vld [vmem:[%s7778_s2] sm:$0xff] }
  0x3f   :  { %5427 = vmatpush3.bf16.msra.mxu1 %v6326_v13  ;;  %5049 = vmatprep.mubr.msk.f32.mxu1 %vm101_vm0, %v5979_v43 }
  0x40   :  { %5036 = vmatmul.mubr.msk.f32.gmra.mrb[26].mxu0 %vm101_vm0, %v5954_v39  ;;  %5429 = vmatprep.subr.bf16.mxu1 %v6349_v20  ;;  %v4025_v39 = vrot.slane %v6377_v34, %v6355_v26 }
  0x41   :  { %5423 = vmatpush3.bf16.msra.mxu0 %v6339_v18  ;;  %5060 = vmatprep.mubr.msk.f32.mxu0 %vm101_vm0, %v6009_v48 }
  0x42   :  { %5434 = vmatprep.subr.msk.bf16.mxu0 %vm6368_vm1, %v6156_v56  ;;  %5050 = vmatmul.mubr.msk.f32.gmra.mrb[26].mxu1 %vm101_vm0, %v5984_v44 }
  0x43   :  { %5431 = vmatpush3.bf16.msra.mxu1 %v6349_v20  ;;  %5074 = vmatprep.mubr.msk.f32.mxu1 %vm101_vm0, %v6039_v53 }
  0x44   :  { %5061 = vmatmul.mubr.msk.f32.vlgmr.msra.gmra.mrb[28].mxu0 %vm101_vm0, %v6014_v49  ;;  %5446 = vmatprep.subr.msk.bf16.mxu1 %vm6368_vm1, %v6176_v61 }
  0x45   :  { %5063 = vmatprep.mubr.msk.f32.mxu0 %vm101_vm0, %v6069_v58  ;;  %3617 = vbcast.lane.b32.xlu0 %v3615_v38, 256 }
  0x46   :  { %5075 = vmatmul.mubr.msk.f32.vlgmr.msra.gmra.mrb[28].mxu1 %vm101_vm0, %v6044_v54  ;;  %4027 = vbcast.lane.b32.xlu1 %v4025_v39, 256 }
  0x47   :  { %5077 = vmatprep.mubr.msk.f32.mxu1 %vm101_vm0, %v6099_v63 }
  0x48   :  { %5064 = vmatmul.mubr.msk.f32.gmra.mrb[30].mxu0 %vm101_vm0, %v6074_v59 }
  0x49   :  { %5088 = vmatprep.mubr.msk.f32.mxu0 %vm101_vm0, %v5767_v5  ;;  %3621 = vbcast.lane.b32.xlu0 %v3615_v38, 264 }
  0x4a   :  { %5437 = vmatpush3.bf16.xpose.msk.msra.mxu0 %vm6368_vm1, %v6156_v56  ;;  %5078 = vmatmul.mubr.msk.f32.gmra.mrb[30].mxu1 %vm101_vm0, %v6104_v41  ;;  %v3633_v56 = vsub.s32 1, %v6332_v16 }
  0x4b   :  { %5440 = vmatprep.subr.msk.bf16.mxu0 %vm6368_vm1, %v6196_v36  ;;  %5102 = vmatprep.mubr.msk.f32.mxu1 %vm101_vm0, %v5829_v17 }
  0x4c   :  { %5449 = vmatpush3.bf16.xpose.msk.msra.mxu1 %vm6368_vm1, %v6176_v61  ;;  %4031 = vbcast.lane.b32.xlu1 %v4025_v39, 264  ;;  %v3634_v5 = vrot.slane %v6363_v29, %v3633_v56  ;;  %v4044_v61 = vrot.slane %v6377_v34, %v3633_v56  ;;  %v7890_v56 = vld [vmem:[#allocation30_spill] sm:$0xff] }
  0x4d   :  { %5452 = vmatprep.subr.msk.bf16.mxu1 %vm6368_vm1, %v6216_v51  ;;  %3625 = vbcast.lane.b32.xlu0 %v3615_v38, 272 }
  0x50   :  { %4035 = vbcast.lane.b32.xlu1 %v4025_v39, 272 }
  0x51   :  { %3629 = vbcast.lane.b32.xlu0 %v3615_v38, 280  ;;  %v7886_v38 = vld [vmem:[#allocation22_spill] sm:$0xff] }
  0x52   :  { %5443 = vmatpush3.bf16.xpose.msk.msra.mxu0 %vm6368_vm1, %v6196_v36  ;;  %v7887_v36 = vld [vmem:[#allocation23_spill] sm:$0xff] }
  0x53   :  { %5458 = vmatprep.subr.msk.bf16.mxu0 %vm6368_vm1, %v6231_v22 }
  0x54   :  { %5455 = vmatpush3.bf16.xpose.msk.msra.mxu1 %vm6368_vm1, %v6216_v51  ;;  %4039 = vbcast.lane.b32.xlu1 %v4025_v39, 280  ;;  %v7888_v39 = vld [vmem:[#allocation26_spill] sm:$0xff]  ;;  %v7889_v51 = vld [vmem:[#allocation28_spill] sm:$0xff] }
  0x55   :  { %5470 = vmatprep.subr.msk.bf16.mxu1 %vm6368_vm1, %v6246_v30  ;;  %3636 = vbcast.lane.b32.xlu0 %v3634_v5, 256 }
  0x58   :  { %4046 = vbcast.lane.b32.xlu1 %v4044_v61, 256 }
  0x59   :  { %5089 = vmatmul.mubr.msk.f32.vlgmr.msra.gmra.mrb[32].mxu0 %vm101_vm0, %v7886_v38  ;;  %3640 = vbcast.lane.b32.xlu0 %v3634_v5, 264 }
  0x5a   :  { %5461 = vmatpush3.bf16.xpose.msk.msra.mxu0 %vm6368_vm1, %v6231_v22  ;;  %5091 = vmatprep.mubr.msk.f32.mxu0 %vm101_vm0, %v7887_v36  ;;  %v3652_v22 = vsub.s32 2, %v6332_v16 }
  0x5b   :  { %5103 = vmatmul.mubr.msk.f32.vlgmr.msra.gmra.mrb[32].mxu1 %vm101_vm0, %v7888_v39  ;;  %5464 = vmatprep.subr.msk.bf16.mxu0 %vm6368_vm1, %v6256_v42  ;;  %v7891_v39 = vld [vmem:[#allocation34_spill] sm:$0xff] }
  0x5c   :  { %5473 = vmatpush3.bf16.xpose.msk.msra.mxu1 %vm6368_vm1, %v6246_v30  ;;  %5105 = vmatprep.mubr.msk.f32.mxu1 %vm101_vm0, %v7889_v51  ;;  %v3653_v30 = vrot.slane %v6363_v29, %v3652_v22 }
  0x5d   :  { %5092 = vmatmul.mubr.msk.f32.gmra.mrb[34].mxu0 %vm101_vm0, %v7890_v56  ;;  %5476 = vmatprep.subr.msk.bf16.mxu1 %vm6368_vm1, %v6266_v0 }
  0x5e   :  { %5116 = vmatprep.mubr.msk.f32.mxu0 %vm101_vm0, %v5930_v35  ;;  %3644 = vbcast.lane.b32.xlu0 %v3634_v5, 272  ;;  %v7892_v35 = vld [vmem:[#allocation38_spill] sm:$0xff] }
  0x5f   :  { %5106 = vmatmul.mubr.msk.f32.gmra.mrb[34].mxu1 %vm101_vm0, %v7891_v39  ;;  %4050 = vbcast.lane.b32.xlu1 %v4044_v61, 264  ;;  %v7920_v39 = vld [vmem:[#allocation35_spill] sm:$0xff] }
  0x60   :  { %5130 = vmatprep.mubr.msk.f32.mxu1 %vm101_vm0, %v5962_v40  ;;  %v7908_v40 = vld [vmem:[#allocation37_spill] sm:$0xff] }
  0x62   :  { %5467 = vmatpush3.bf16.xpose.msk.msra.mxu0 %vm6368_vm1, %v6256_v42  ;;  %3648 = vbcast.lane.b32.xlu0 %v3634_v5, 280  ;;  %v7910_v42 = vld [vmem:[#allocation18_spill] sm:$0xff] }
  0x63   :  { %5482 = vmatprep.subr.msk.bf16.mxu0 %vm6368_vm1, %v6276_v6  ;;  %4054 = vbcast.lane.b32.xlu1 %v4044_v61, 272 }
  0x64   :  { %5479 = vmatpush3.bf16.xpose.msk.msra.mxu1 %vm6368_vm1, %v6266_v0  ;;  %v4063_v0 = vrot.slane %v6377_v34, %v3652_v22  ;;  %v7919_v22 = vld [vmem:[#allocation27_spill] sm:$0xff] }
  0x65   :  { %5494 = vmatprep.subr.msk.bf16.mxu1 %vm6368_vm1, %v6286_v2 }
  0x66   :  { %3655 = vbcast.lane.b32.xlu0 %v3653_v30, 256 }
  0x67   :  { %4058 = vbcast.lane.b32.xlu1 %v4044_v61, 280 }
  0x69   :  { %5117 = vmatmul.mubr.msk.f32.vlgmr.msra.gmra.mrb[36].mxu0 %vm101_vm0, %v7892_v35  ;;  %v7921_v35 = vld [vmem:[#allocation32_spill] sm:$0xff] }
  0x6a   :  { %5485 = vmatpush3.bf16.xpose.msk.msra.mxu0 %vm6368_vm1, %v6276_v6  ;;  %5119 = vmatprep.mubr.msk.f32.mxu0 %vm101_vm0, %v5990_v45  ;;  %v7911_v45 = vld [vmem:[#allocation20_spill] sm:$0xff] }
  0x6b   :  { %5131 = vmatmul.mubr.msk.f32.vlgmr.msra.gmra.mrb[36].mxu1 %vm101_vm0, %v6004_v47  ;;  %5488 = vmatprep.subr.msk.bf16.mxu0 %vm6368_vm1, %v6296_v12 }
  0x6c   :  { %5497 = vmatpush3.bf16.xpose.msk.msra.mxu1 %vm6368_vm1, %v6286_v2  ;;  %5133 = vmatprep.mubr.msk.f32.mxu1 %vm101_vm0, %v6022_v50  ;;  %v3671_v2 = vsub.s32 3, %v6332_v16  ;;  %v7913_v50 = vld [vmem:[#allocation19_spill] sm:$0xff] }
  0x6d   :  { %5120 = vmatmul.mubr.msk.f32.gmra.mrb[38].mxu0 %vm101_vm0, %v6034_v52  ;;  %5500 = vmatprep.subr.msk.bf16.mxu1 %vm6368_vm1, %v6306_v9  ;;  %v7914_v52 = vld [vmem:[#allocation40_spill] sm:$0xff] }
  0x6e   :  { %5144 = vmatprep.mubr.msk.f32.mxu0 %vm101_vm0, %v6050_v55  ;;  %3659 = vbcast.lane.b32.xlu0 %v3653_v30, 264  ;;  %v3672_v5 = vrot.slane %v6363_v29, %v3671_v2  ;;  %v4082_v6 = vrot.slane %v6377_v34, %v3671_v2  ;;  %v7915_v55 = vld [vmem:[#allocation25_spill] sm:$0xff] }
  0x6f   :  { %5134 = vmatmul.mubr.msk.f32.gmra.mrb[38].mxu1 %vm101_vm0, %v6061_v57  ;;  %4065 = vbcast.lane.b32.xlu1 %v4063_v0, 256  ;;  %v7916_v57 = vld [vmem:[#allocation31_spill] sm:$0xff] }
  0x70   :  { %5158 = vmatprep.mubr.msk.f32.mxu1 %vm101_vm0, %v6082_v60  ;;  %v3728_v60 = vsub.s32 6, %v6332_v16 }
  0x72   :  { %5491 = vmatpush3.bf16.xpose.msk.msra.mxu0 %vm6368_vm1, %v6296_v12  ;;  %3663 = vbcast.lane.b32.xlu0 %v3653_v30, 272  ;;  %v7895_v12 = vld [vmem:[#allocation10_spill] sm:$0xff] }
  0x73   :  { %5506 = vmatprep.subr.msk.bf16.mxu0 %vm6368_vm1, %v6316_v11  ;;  %4069 = vbcast.lane.b32.xlu1 %v4063_v0, 264 }
  0x74   :  { %5503 = vmatpush3.bf16.xpose.msk.msra.mxu1 %vm6368_vm1, %v6306_v9  ;;  %v7893_v9 = vld [vmem:[#allocation7_spill] sm:$0xff] }
  0x75   :  { %5518 = vmatprep.subr.msk.bf16.mxu1 %vm6368_vm1, %v6326_v13 }
  0x76   :  { %3667 = vbcast.lane.b32.xlu0 %v3653_v30, 280  ;;  %v3729_v30 = vrot.slane %v6363_v29, %v3728_v60 }
  0x77   :  { %4073 = vbcast.lane.b32.xlu1 %v4063_v0, 272 }
  0x79   :  { %5145 = vmatmul.mubr.msk.f32.vlgmr.msra.gmra.mrb[40].mxu0 %vm101_vm0, %v6094_v62  ;;  %v5712_v62 = vmov 1966171168  }
  0x7a   :  { %5509 = vmatpush3.bf16.xpose.msk.msra.mxu0 %vm6368_vm1, %v6316_v11  ;;  %5147 = vmatprep.mubr.msk.f32.mxu0 %vm101_vm0, %v6110_v46  ;;  %v7894_v11 = vld [vmem:[#allocation12_spill] sm:$0xff]  ;;  %v7912_v46 = vld [vmem:[#allocation39_spill] sm:$0xff]  ;;  %v3565_v61 = vunpack.c.l.s4 %v5712_v62 }
  0x7b   :  { %5159 = vmatmul.mubr.msk.f32.vlgmr.msra.gmra.mrb[40].mxu1 %vm101_vm0, %v6124_v31  ;;  %5512 = vmatprep.subr.msk.bf16.mxu0 %vm6368_vm1, %v6339_v18  ;;  %v7905_v31 = vld [vmem:[#allocation11_spill] sm:$0xff] }
  0x7c   :  { %5521 = vmatpush3.bf16.xpose.msk.msra.mxu1 %vm6368_vm1, %v6326_v13  ;;  %5161 = vmatprep.mubr.msk.f32.mxu1 %vm101_vm0, %v6132_v25  ;;  %v7903_v25 = vld [vmem:[#allocation14_spill] sm:$0xff]  ;;  %v3566_v2 = vunpack.c.0.s8 %v3565_v61 }
  0x7d   :  { %5148 = vmatmul.mubr.msk.f32.gmra.mrb[42].mxu0 %vm101_vm0, %v6144_v21  ;;  %5524 = vmatprep.subr.msk.bf16.mxu1 %vm6368_vm1, %v6349_v20  ;;  %v7901_v21 = vld [vmem:[#allocation6_spill] sm:$0xff] }
  0x7e   :  { %5172 = vmatprep.mubr.msk.f32.mxu0 %vm101_vm0, %v6150_v14  ;;  %3674 = vbcast.lane.b32.xlu0 %v3672_v5, 256  ;;  %v7898_v14 = vld [vmem:[#allocation9_spill] sm:$0xff] }
  0x7f   :  { %5162 = vmatmul.mubr.msk.f32.gmra.mrb[42].mxu1 %vm101_vm0, %v6164_v15  ;;  %4077 = vbcast.lane.b32.xlu1 %v4063_v0, 280  ;;  %v7899_v15 = vld [vmem:[#allocation16_spill] sm:$0xff]  ;;  %v7922_v0 = vld [vmem:[#allocation43_spill] sm:$0xff] }
  0x80   :  { %5186 = vmatprep.mubr.msk.f32.mxu1 %vm101_vm0, %v6172_v7  ;;  %v3690_v7 = vsub.s32 4, %v6332_v16 }
  0x82   :  { %5515 = vmatpush3.bf16.xpose.msk.msra.mxu0 %vm6368_vm1, %v6339_v18  ;;  %3678 = vbcast.lane.b32.xlu0 %v3672_v5, 264  ;;  %v3691_v13 = vrot.slane %v6363_v29, %v3690_v7  ;;  %v4101_v18 = vrot.slane %v6377_v34, %v3690_v7  ;;  %v6725_v7 = vsub.s32 %v3566_v2, %v6332_v16 }
  0x83   :  { %5530 = vmatprep.subr.msk.bf16.mxu0 %vm6368_vm1, %v7893_v9  ;;  %4084 = vbcast.lane.b32.xlu1 %v4082_v6, 256 }
  0x84   :  { %5527 = vmatpush3.bf16.xpose.msk.msra.mxu1 %vm6368_vm1, %v6349_v20  ;;  %v7900_v20 = vld [vmem:[#allocation21_spill] sm:$0xff] }
  0x85   :  { %5542 = vmatprep.subr.msk.bf16.mxu1 %vm6368_vm1, %v7894_v11 }
  0x86   :  { %3682 = vbcast.lane.b32.xlu0 %v3672_v5, 272 }
  0x87   :  { %4088 = vbcast.lane.b32.xlu1 %v4082_v6, 264 }
  0x89   :  { %5173 = vmatmul.mubr.msk.f32.vlgmr.msra.gmra.mrb[44].mxu0 %vm101_vm0, %v6184_v10  ;;  %v7897_v10 = vld [vmem:[#allocation5_spill] sm:$0xff] }
  0x8a   :  { %5533 = vmatpush3.bf16.xpose.msk.msra.mxu0 %vm6368_vm1, %v7893_v9  ;;  %5175 = vmatprep.mubr.msk.f32.mxu0 %vm101_vm0, %v6190_v3  ;;  %v7896_v3 = vld [vmem:[#allocation17_spill] sm:$0xff]  ;;  %v7924_v9 = vld [vmem:[#allocation44_spill] sm:$0xff] }
  0x8b   :  { %5187 = vmatmul.mubr.msk.f32.vlgmr.msra.gmra.mrb[44].mxu1 %vm101_vm0, %v6204_v27  ;;  %5536 = vmatprep.subr.msk.bf16.mxu0 %vm6368_vm1, %v7895_v12  ;;  %v7904_v27 = vld [vmem:[#allocation29_spill] sm:$0xff] }
  0x8c   :  { %5545 = vmatpush3.bf16.xpose.msk.msra.mxu1 %vm6368_vm1, %v7894_v11  ;;  %5189 = vmatprep.mubr.msk.f32.mxu1 %vm101_vm0, %v6212_v32  ;;  %v7906_v32 = vld [vmem:[#allocation15_spill] sm:$0xff]  ;;  %v4139_v11 = vrot.slane %v6377_v34, %v3728_v60 }
  0x8d   :  { %5176 = vmatmul.mubr.msk.f32.gmra.mrb[46].mxu0 %vm101_vm0, %v6224_v24  ;;  %5548 = vmatprep.subr.msk.bf16.mxu1 %vm6368_vm1, %v7896_v3  ;;  %v7902_v24 = vld [vmem:[#allocation24_spill] sm:$0xff] }
  0x8e   :  { %5200 = vmatprep.mubr.msk.f32.mxu0 %vm101_vm0, %v7897_v10  ;;  %3686 = vbcast.lane.b32.xlu0 %v3672_v5, 280 }
  0x8f   :  { %5190 = vmatmul.mubr.msk.f32.gmra.mrb[46].mxu1 %vm101_vm0, %v6239_v37  ;;  %4092 = vbcast.lane.b32.xlu1 %v4082_v6, 272  ;;  %v7907_v37 = vld [vmem:[#allocation33_spill] sm:$0xff] }
  0x90   :  { %5214 = vmatprep.mubr.msk.f32.mxu1 %vm101_vm0, %v7898_v14 }
  0x92   :  { %5539 = vmatpush3.bf16.xpose.msk.msra.mxu0 %vm6368_vm1, %v7895_v12  ;;  %3693 = vbcast.lane.b32.xlu0 %v3691_v13, 256 }
  0x93   :  { %5554 = vmatprep.subr.msk.bf16.mxu0 %vm6368_vm1, %v7899_v15  ;;  %4096 = vbcast.lane.b32.xlu1 %v4082_v6, 280  ;;  %v7923_v6 = vld [vmem:[#allocation36_spill] sm:$0xff] }
  0x94   :  { %5551 = vmatpush3.bf16.xpose.msk.msra.mxu1 %vm6368_vm1, %v7896_v3 }
  0x95   :  { %5566 = vmatprep.subr.msk.bf16.mxu1 %vm6368_vm1, %v7900_v20 }
  0x96   :  { %3697 = vbcast.lane.b32.xlu0 %v3691_v13, 264 }
  0x97   :  { %4103 = vbcast.lane.b32.xlu1 %v4101_v18, 256 }
  0x99   :  { %5201 = vmatmul.mubr.msk.f32.vlgmr.msra.gmra.mrb[48].mxu0 %vm101_vm0, %v5748_v1 }
  0x9a   :  { %5557 = vmatpush3.bf16.xpose.msk.msra.mxu0 %vm6368_vm1, %v7899_v15  ;;  %5203 = vmatprep.mubr.msk.f32.mxu0 %vm101_vm0, %v7901_v21 }
  0x9b   :  { %5215 = vmatmul.mubr.msk.f32.vlgmr.msra.gmra.mrb[48].mxu1 %vm101_vm0, %v5783_v8  ;;  %5560 = vmatprep.subr.msk.bf16.mxu0 %vm6368_vm1, %v7902_v24  ;;  %v3709_v8 = vsub.s32 5, %v6332_v16 }
  0x9c   :  { %5569 = vmatpush3.bf16.xpose.msk.msra.mxu1 %vm6368_vm1, %v7900_v20  ;;  %5217 = vmatprep.mubr.msk.f32.mxu1 %vm101_vm0, %v7903_v25 }
  0x9d   :  { %5204 = vmatmul.mubr.msk.f32.gmra.mrb[50].mxu0 %vm101_vm0, %v5762_v4  ;;  %5572 = vmatprep.subr.msk.bf16.mxu1 %vm6368_vm1, %v7904_v27  ;;  %v3710_v4 = vrot.slane %v6363_v29, %v3709_v8  ;;  %v4120_v47 = vrot.slane %v6377_v34, %v3709_v8 }
  0x9e   :  { %5228 = vmatprep.mubr.msk.f32.mxu0 %vm101_vm0, %v7905_v31  ;;  %3701 = vbcast.lane.b32.xlu0 %v3691_v13, 272  ;;  %v7926_v31 = vld [vmem:[#allocation8_spill] sm:$0xff] }
  0x9f   :  { %5218 = vmatmul.mubr.msk.f32.gmra.mrb[50].mxu1 %vm101_vm0, %v7906_v32  ;;  %4107 = vbcast.lane.b32.xlu1 %v4101_v18, 264 }
  0xa0   :  { %5242 = vmatprep.mubr.msk.f32.mxu1 %vm101_vm0, %v5842_v19  ;;  %v7909_v19 = vld [vmem:[#allocation13_spill] sm:$0xff] }
  0xa2   :  { %5563 = vmatpush3.bf16.xpose.msk.msra.mxu0 %vm6368_vm1, %v7902_v24  ;;  %3705 = vbcast.lane.b32.xlu0 %v3691_v13, 280  ;;  %v3980_v13 = vrot.slane %v6363_v29, %v6725_v7  ;;  %v84_v24 = vadd.s32 8, %v6332_v16 }
  0xa3   :  { %5578 = vmatprep.subr.msk.bf16.mxu0 %vm6368_vm1, %v7907_v37  ;;  %4111 = vbcast.lane.b32.xlu1 %v4101_v18, 272 }
  0xa4   :  { %5575 = vmatpush3.bf16.xpose.msk.msra.mxu1 %vm6368_vm1, %v7904_v27  ;;  %v6757_v15 = vrot.slane %v3980_v13, %v6725_v7  ;;  %v86_v27 = vadd.s32 24, %v6332_v16 }
  0xa5   :  { %5590 = vmatprep.subr.msk.bf16.mxu1 %vm6368_vm1, %v7908_v40 }
  0xa6   :  { %3712 = vbcast.lane.b32.xlu0 %v3710_v4, 256 }
  0xa7   :  { %4115 = vbcast.lane.b32.xlu1 %v4101_v18, 280 }
  0xa9   :  { %5229 = vmatmul.mubr.msk.f32.vlgmr.msra.gmra.mrb[52].mxu0 %vm101_vm0, %v7909_v19 }
  0xaa   :  { %5581 = vmatpush3.bf16.xpose.msk.msra.mxu0 %vm6368_vm1, %v7907_v37  ;;  %5231 = vmatprep.mubr.msk.f32.mxu0 %vm101_vm0, %v7910_v42  ;;  %v85_v37 = vadd.s32 16, %v6332_v16 }
  0xab   :  { %5243 = vmatmul.mubr.msk.f32.vlgmr.msra.gmra.mrb[52].mxu1 %vm101_vm0, %v7911_v45  ;;  %5584 = vmatprep.subr.msk.bf16.mxu0 %vm6368_vm1, %v7912_v46 }
  0xac   :  { %5593 = vmatpush3.bf16.xpose.msk.msra.mxu1 %vm6368_vm1, %v7908_v40  ;;  %5245 = vmatprep.mubr.msk.f32.mxu1 %vm101_vm0, %v5863_v23  ;;  %v7917_v23 = vld [vmem:[#allocation41_spill] sm:$0xff] }
  0xad   :  { %5232 = vmatmul.mubr.msk.f32.gmra.mrb[54].mxu0 %vm101_vm0, %v7913_v50  ;;  %5596 = vmatprep.subr.msk.bf16.mxu1 %vm6368_vm1, %v7914_v52 }
  0xae   :  { %5256 = vmatprep.mubr.msk.f32.mxu0 %vm101_vm0, %v5889_v28  ;;  %3716 = vbcast.lane.b32.xlu0 %v3710_v4, 264  ;;  %v7918_v28 = vld [vmem:[#allocation42_spill] sm:$0xff] }
  0xaf   :  { %5246 = vmatmul.mubr.msk.f32.gmra.mrb[54].mxu1 %vm101_vm0, %v7915_v55  ;;  %4122 = vbcast.lane.b32.xlu1 %v4120_v47, 256 }
  0xb0   :  { %5270 = vmatprep.mubr.msk.f32.mxu1 %vm101_vm0, %v7916_v57 }
  0xb2   :  { %5587 = vmatpush3.bf16.xpose.msk.msra.mxu0 %vm6368_vm1, %v7912_v46  ;;  %3720 = vbcast.lane.b32.xlu0 %v3710_v4, 272  ;;  %v3988_v46 = vcombine.high %v3980_v13, %v3980_v13 }
  0xb3   :  { %5602 = vmatprep.subr.msk.bf16.mxu0 %vm6368_vm1, %v7917_v23  ;;  %4126 = vbcast.lane.b32.xlu1 %v4120_v47, 264 }
  0xb4   :  { %5599 = vmatpush3.bf16.xpose.msk.msra.mxu1 %vm6368_vm1, %v7914_v52 }
  0xb5   :  { %5614 = vmatprep.subr.msk.bf16.mxu1 %vm6368_vm1, %v7918_v28 }
  0xb6   :  { %3724 = vbcast.lane.b32.xlu0 %v3710_v4, 280 }
  0xb7   :  { %4130 = vbcast.lane.b32.xlu1 %v4120_v47, 272  ;;  %v3618_v51 = vpop.permute.xlu0 %3617 }
  0xb8   :  { %v4028_v3 = vpop.permute.xlu1 %4027 }
  0xb9   :  { %5257 = vmatmul.mubr.msk.f32.vlgmr.msra.gmra.mrb[56].mxu0 %vm101_vm0, %v7919_v22 }
  0xba   :  { %5605 = vmatpush3.bf16.xpose.msk.msra.mxu0 %vm6368_vm1, %v7917_v23  ;;  %5259 = vmatprep.mubr.msk.f32.mxu0 %vm101_vm0, %v7920_v39 }
  0xbb   :  { %5271 = vmatmul.mubr.msk.f32.vlgmr.msra.gmra.mrb[56].mxu1 %vm101_vm0, %v7921_v35  ;;  %5608 = vmatprep.subr.msk.bf16.mxu0 %vm6368_vm1, %v7922_v0  ;;  %v3622_v5 = vpop.permute.xlu0 %3621 }
  0xbc   :  { %5617 = vmatpush3.bf16.xpose.msk.msra.mxu1 %vm6368_vm1, %v7918_v28  ;;  %5273 = vmatprep.mubr.msk.f32.mxu1 %vm101_vm0, %v5979_v43 }
  0xbd   :  { %5260 = vmatmul.mubr.msk.f32.gmra.mrb[58].mxu0 %vm101_vm0, %v7923_v6  ;;  %5620 = vmatprep.subr.msk.bf16.mxu1 %vm6368_vm1, %v7924_v9 }
  0xbe   :  { %5284 = vmatprep.mubr.msk.f32.mxu0 %vm101_vm0, %v6009_v48  ;;  %3731 = vbcast.lane.b32.xlu0 %v3729_v30, 256  ;;  %v3570_v48 = vrot.slane %v6377_v34, %v6725_v7 }
  0xbf   :  { %5274 = vmatmul.mubr.msk.f32.gmra.mrb[58].mxu1 %vm101_vm0, %v5984_v44  ;;  %4134 = vbcast.lane.b32.xlu1 %v4120_v47, 280  ;;  %v3626_v43 = vpop.permute.xlu0 %3625  ;;  %v3747_v44 = vsub.s32 7, %v6332_v16  ;;  %v5713_v47 = vmov 0.0  }
  0xc0   :  { %5298 = vmatprep.mubr.msk.f32.mxu1 %vm101_vm0, %v6039_v53  ;;  %v6739_v53 = vrot.slane %v3570_v48, %v6725_v7  ;;  %v3578_v25 = vcombine.high %v3570_v48, %v3570_v48 }
  0xc1   :  { %v3748_v33 = vrot.slane %v6363_v29, %v3747_v44  ;;  %v6766_v18 = vrot.slane %v6377_v34, %v3747_v44  ;;  %v3973_v44 = vcombine.high %v6363_v29, %v6363_v29 }
  0xc2   :  { %5611 = vmatpush3.bf16.xpose.msk.msra.mxu0 %vm6368_vm1, %v7922_v0  ;;  %3735 = vbcast.lane.b32.xlu0 %v3729_v30, 264  ;;  %v3767_v14 = vrot.slane %v6739_v53, %v6355_v26  ;;  %v3600_v42 = vrot.slane %v3578_v25, %v6725_v7  ;;  %v3608_v61 = vcombine.high %v6739_v53, %v6739_v53 }
  0xc3   :  { %4141 = vbcast.lane.b32.xlu1 %v4139_v11, 256  ;;  %v6741_v12 = vpop.permute.xlu0 %3629 }
  0xc4   :  { %5623 = vmatpush3.bf16.xpose.msk.msra.mxu1 %vm6368_vm1, %v7924_v9  ;;  %v3805_v20 = vsub.f32 %v3767_v14, %v3622_v5  ;;  %v3806_v32 = vsub.f32 %v3767_v14, %v3626_v43  ;;  %v3807_v23 = vsub.f32 %v3767_v14, %v6741_v12  ;;  %v6796_v60 = vrot.slane %v3600_v42, %v6355_v26 }
  0xc5   :  { %v3610_v39 = vcombine.high %v3600_v42, %v3600_v42 }
  0xc6   :  { %3739 = vbcast.lane.b32.xlu0 %v3729_v30, 272  ;;  %v3837_v8 = vmul.f32 %v3805_v20, %v7886_v38  ;;  %v3838_v55 = vmul.f32 %v3806_v32, %v7887_v36  ;;  %v4018_v36 = vcombine.high %v6757_v15, %v6757_v15  ;;  %v3839_v9 = vmul.f32 %v3807_v23, %v7890_v56 }
  0xc7   :  { %4145 = vbcast.lane.b32.xlu1 %v4139_v11, 264 }
  0xc8   :  { %v3869_v52 = vmul.f32 %v3837_v8, %v3837_v8  ;;  %v3870_v2 = vmul.f32 %v3838_v55, %v3838_v55  ;;  %v6822_v48 = vrot.slane %v4018_v36, %v6355_v26 }
  0xc9   :  { %5285 = vmatmul.mubr.msk.f32.vlgmr.msra.gmra.mrb[60].mxu0 %vm101_vm0, %v6014_v49  ;;  %v6761_v49 = vpop.permute.xlu0 %3636 }
  0xca   :  { %5287 = vmatprep.mubr.msk.f32.mxu0 %vm101_vm0, %v6069_v58  ;;  %3743 = vbcast.lane.b32.xlu0 %v3729_v30, 280  ;;  %v4032_v58 = vpop.permute.xlu1 %4031  ;;  %v3563_v30 = vcombine.high %v6377_v34, %v6377_v34  ;;  %v3901_v0 = vsel %vm101_vm0, %v3869_v52, 0.0  ;;  %v3808_v43 = vsub.f32 %v6796_v60, %v6761_v49  ;;  %v6819_v34 = vrot.slane %v3608_v61, %v6355_v26 }
  0xcb   :  { %5299 = vmatmul.mubr.msk.f32.vlgmr.msra.gmra.mrb[60].mxu1 %vm101_vm0, %v6044_v54  ;;  %4149 = vbcast.lane.b32.xlu1 %v4139_v11, 272  ;;  %v3804_v54 = vsub.f32 %v3767_v14, %v3618_v51  ;;  %v5641_v14 = vld [vmem:[%s7777_s1 + $0x10] sm:$0xff] }
  0xcc   :  { %5301 = vmatprep.mubr.msk.f32.mxu1 %vm101_vm0, %v6099_v63  ;;  %v7925_v63 = vlaneseq  ;;  %v6830_v56 = vrot.slane %v3563_v30, %v6725_v7 }
  0xcd   :  { %5288 = vmatmul.mubr.msk.f32.gmra.mrb[62].mxu0 %vm101_vm0, %v6074_v59  ;;  %v6772_v59 = vrot.slane %v6757_v15, %v6355_v26  ;;  %v6778_v4 = vpop.permute.xlu0 %3640 }
  0xce   :  { %3750 = vbcast.lane.b32.xlu0 %v3748_v33, 256  ;;  %v88_v21 = vand.u32 127, %v7925_v63  ;;  %v4036_v19 = vpop.permute.xlu1 %4035 }
  0xcf   :  { %5302 = vmatmul.mubr.msk.f32.gmra.mrb[62].mxu1 %vm101_vm0, %v6104_v41  ;;  %4153 = vbcast.lane.b32.xlu1 %v4139_v11, 280  ;;  %v3836_v41 = vmul.f32 %v3804_v54, %v7926_v31  ;;  %v4214_v40 = vsub.f32 %v6772_v59, %v4028_v3  ;;  %v4215_v45 = vsub.f32 %v6772_v59, %v4032_v58 }
  0xd0   :  { %vm90_vm2 = vcmp.eq.s32.totalorder %v84_v24, %v88_v21  ;;  %vm89_vm3 = vcmp.eq.s32.totalorder %v6332_v16, %v88_v21  ;;  %vm92_vm4 = vcmp.eq.s32.totalorder %v86_v27, %v88_v21  ;;  %vm91_vm5 = vcmp.eq.s32.totalorder %v85_v37, %v88_v21 }
  0xd1   :  { %v6785_v38 = vsel %vm90_vm2, 1.0, %v5713_v47  ;;  %v3868_v50 = vmul.f32 %v3836_v41, %v3836_v41  ;;  %v6789_v57 = vsel %vm89_vm3, 1.0, %v5713_v47  ;;  %v4246_v16 = vmul.f32 %v4214_v40, %v7897_v10  ;;  %v6798_v62 = vpop.permute.xlu0 %3644 }
  0xd2   :  { %3754 = vbcast.lane.b32.xlu0 %v3748_v33, 264  ;;  %v6793_v28 = vsel %vm92_vm4, 1.0, %v5713_v47  ;;  %v4247_v51 = vmul.f32 %v4215_v45, %v5748_v1  ;;  %v4040_v22 = vpop.permute.xlu1 %4039  ;;  %v4010_v10 = vrot.slane %v3988_v46, %v6725_v7  ;;  %v4216_v5 = vsub.f32 %v6772_v59, %v4036_v19 }
  0xd3   :  { %4160 = vbcast.lane.b32.xlu1 %v6766_v18, 256  ;;  %v3900_v35 = vsel %vm101_vm0, %v3868_v50, 0.0  ;;  %v6813_v6 = vsel %vm91_vm5, 1.0, %v5713_v47  ;;  %v4278_v1 = vmul.f32 %v4246_v16, %v4246_v16  ;;  %v4217_v29 = vsub.f32 %v6772_v59, %v4040_v22 }
  0xd4   :  { %v4020_v11 = vcombine.high %v4010_v10, %v4010_v10  ;;  %v3902_v53 = vadd.f32 %v3901_v0, %v3900_v35  ;;  %v4279_v12 = vmul.f32 %v4247_v51, %v4247_v51  ;;  %v6827_v3 = vrot.slane %v4010_v10, %v6355_v26  ;;  %v5643_v10 = vld [vmem:[%s7776_s0 + $0x28] sm:$0xff] }
  0xd5   :  { %v4248_v15 = vmul.f32 %v5641_v14, %v4216_v5  ;;  %v6838_v49 = vpop.permute.xlu0 %3648  ;;  %v6841_v58 = vrot.slane %v3610_v39, %v6355_v26  ;;  %v4310_v63 = vsel %vm101_vm0, %v4278_v1, 0.0  ;;  %v3871_v21 = vmul.f32 %v3839_v9, %v3839_v9 }
  0xd6   :  { %3758 = vbcast.lane.b32.xlu0 %v3748_v33, 272  ;;  %v4047_v24 = vpop.permute.xlu1 %4046  ;;  %v6846_v25 = vrot.slane %v4020_v11, %v6355_v26  ;;  %v3840_v59 = vmul.f32 %v3808_v43, %v5829_v17  ;;  %v3809_v31 = vsub.f32 %v6796_v60, %v6778_v4  ;;  %v6853_v41 = vrot.slane %v3973_v44, %v6725_v7  ;;  %v5642_v4 = vld [vmem:[%s7777_s1 + $0x18] sm:$0xff] }
  0xd7   :  { %4164 = vbcast.lane.b32.xlu1 %v6766_v18, 264  ;;  %v4311_v40 = vsel %vm101_vm0, %v4279_v12, 0.0  ;;  %v6858_v19 = vrot.slane %v6830_v56, %v6725_v7  ;;  %v4280_v17 = vmul.f32 %v4248_v15, %v4248_v15  ;;  %v4249_v47 = vmul.f32 %v5642_v4, %v4217_v29  ;;  %v5644_v29 = vld [vmem:[%s7777_s1 + $0x20] sm:$0xff] }
  0xd8   :  { %v3905_v16 = vsel %vm101_vm0, %v3871_v21, 0.0  ;;  %v4218_v23 = vsub.f32 %v6827_v3, %v4047_v24  ;;  %v3872_v22 = vmul.f32 %v3840_v59, %v3840_v59  ;;  %v3841_v39 = vmul.f32 %v5643_v10, %v3809_v31  ;;  %v5645_v31 = vld [vmem:[%s7776_s0 + $0x30] sm:$0xff] }
  0xd9   :  { %v6873_v30 = vpop.permute.xlu0 %3655  ;;  %v4312_v5 = vadd.f32 %v4311_v40, %v4310_v63  ;;  %v3810_v1 = vsub.f32 %v6796_v60, %v6798_v62  ;;  %v4313_v14 = vsel %vm101_vm0, %v4280_v17, 0.0  ;;  %v4281_v15 = vmul.f32 %v4249_v47, %v4249_v47 }
  0xda   :  { %3762 = vbcast.lane.b32.xlu0 %v3748_v33, 280  ;;  %v3903_v33 = vsel %vm101_vm0, %v3870_v2, 0.0  ;;  %v4051_v9 = vpop.permute.xlu1 %4050  ;;  %v3907_v63 = vsel %vm101_vm0, %v3872_v22, 0.0  ;;  %v3873_v21 = vmul.f32 %v3841_v39, %v3841_v39 }
  0xdb   :  { %4168 = vbcast.lane.b32.xlu1 %v6766_v18, 272  ;;  %v3904_v37 = vadd.f32 %v3903_v33, %v3902_v53  ;;  %v4219_v24 = vsub.f32 %v6827_v3, %v4051_v9 }
  0xdd   :  { %v3906_v33 = vadd.f32 %v3905_v16, %v3904_v37 }
  0xde   :  { %v4055_v16 = vpop.permute.xlu1 %4054 }
  0xdf   :  { %v4866_v13 = vpop.f32.mrb[0].mxu0  ;;  %4172 = vbcast.lane.b32.xlu1 %v6766_v18, 280 }
  0xe0   :  { %v879_v54 = vsub.f32 %v4866_v13, %v6785_v38  ;;  %v180_v20 = vpop.f32.mrb[1].mxu0  ;;  %v6898_v17 = vpop.permute.xlu0 %3659 }
  0xe1   :  { %v878_v27 = vsub.f32 %v180_v20, %v6789_v57  ;;  %v4880_v18 = vpop.f32.mrb[0].mxu1 }
  0xe2   :  { %v911_v8 = vmul.f32 %v879_v54, %v879_v54  ;;  %v277_v32 = vpop.f32.mrb[1].mxu1  ;;  %v883_v0 = vsub.f32 %v4880_v18, %v6785_v38  ;;  %v4250_v54 = vmul.f32 %v5644_v29, %v4218_v23 }
  0xe3   :  { %v910_v42 = vmul.f32 %v878_v27, %v878_v27  ;;  %v4869_v45 = vpop.f32.mrb[2].mxu0  ;;  %v882_v46 = vsub.f32 %v277_v32, %v6789_v57  ;;  %v3811_v32 = vsub.f32 %v6796_v60, %v6838_v49  ;;  %v3908_v49 = vadd.f32 %v3907_v63, %v3906_v33 }
  0xe4   :  { %v943_v50 = vsel %vm101_vm0, %v911_v8, 0.0  ;;  %v881_v52 = vsub.f32 %v4869_v45, %v6793_v28  ;;  %v190_v55 = vpop.f32.mrb[3].mxu0  ;;  %v915_v18 = vmul.f32 %v883_v0, %v883_v0  ;;  %v3842_v8 = vmul.f32 %v5645_v31, %v3810_v1  ;;  %v6927_v63 = vpop.permute.xlu0 %3663  ;;  %v5648_v31 = vld [vmem:[%s7777_s1 + $0x30] sm:$0xff] }
  0xe5   :  { %v942_v61 = vsel %vm101_vm0, %v910_v42, 0.0  ;;  %v880_v36 = vsub.f32 %v190_v55, %v6813_v6  ;;  %v4883_v51 = vpop.f32.mrb[2].mxu1  ;;  %v914_v53 = vmul.f32 %v882_v46, %v882_v46  ;;  %v4282_v55 = vmul.f32 %v4250_v54, %v4250_v54 }
  0xe6   :  { %v944_v35 = vadd.f32 %v943_v50, %v942_v61  ;;  %v287_v2 = vpop.f32.mrb[3].mxu1  ;;  %v913_v11 = vmul.f32 %v881_v52, %v881_v52  ;;  %v885_v42 = vsub.f32 %v4883_v51, %v6793_v28  ;;  %v4314_v50 = vadd.f32 %v4313_v14, %v4312_v5 }
  0xe7   :  { %v912_v43 = vmul.f32 %v880_v36, %v880_v36  ;;  %v4894_v44 = vpop.f32.mrb[4].mxu0  ;;  %v884_v12 = vsub.f32 %v287_v2, %v6813_v6  ;;  %v949_v40 = vsel %vm101_vm0, %v914_v53, 0.0  ;;  %v4315_v52 = vsel %vm101_vm0, %v4281_v15, 0.0  ;;  %v5646_v36 = vld [vmem:[%s7777_s1 + $0x28] sm:$0xff] }
  0xe8   :  { %v374_v13 = vpop.f32.mrb[5].mxu0  ;;  %v947_v37 = vsel %vm101_vm0, %v913_v11, 0.0  ;;  %v3909_v61 = vsel %vm101_vm0, %v3873_v21, 0.0  ;;  %v4251_v51 = vmul.f32 %v5646_v36, %v4219_v24  ;;  %v3874_v39 = vmul.f32 %v3842_v8, %v3842_v8  ;;  %v4059_v8 = vpop.permute.xlu1 %4058 }
  0xe9   :  { %v945_v20 = vsel %vm101_vm0, %v912_v43, 0.0  ;;  %v6884_v62 = vpop.f32.mrb[4].mxu1  ;;  %v916_v46 = vmul.f32 %v884_v12, %v884_v12  ;;  %v886_v23 = vsub.f32 %v374_v13, %v6789_v57  ;;  %v4220_v2 = vsub.f32 %v6827_v3, %v4055_v16 }
  0xea   :  { %v946_v27 = vadd.f32 %v945_v20, %v944_v35  ;;  %v6888_v59 = vpop.f32.mrb[5].mxu1  ;;  %v5647_v35 = vld [vmem:[%s7776_s0 + $0x38] sm:$0xff]  ;;  %v951_v5 = vsel %vm101_vm0, %v915_v18, 0.0  ;;  %v887_v1 = vsub.f32 %v4894_v44, %v6785_v38  ;;  %v917_v9 = vmul.f32 %v885_v42, %v885_v42 }
  0xeb   :  { %v4897_v45 = vpop.f32.mrb[6].mxu0  ;;  %v3843_v0 = vmul.f32 %v5647_v35, %v3811_v32  ;;  %v953_v11 = vsel %vm101_vm0, %v916_v46, 0.0  ;;  %v4316_v13 = vadd.f32 %v4315_v52, %v4314_v50  ;;  %v4317_v33 = vsel %vm101_vm0, %v4282_v55, 0.0  ;;  %v5649_v52 = vld [vmem:[%s7776_s0 + $0x40] sm:$0xff] }
  0xec   :  { %v948_v4 = vadd.f32 %v947_v37, %v946_v27  ;;  %v384_v47 = vpop.f32.mrb[7].mxu0  ;;  %v3812_v14 = vsub.f32 %v6819_v34, %v6873_v30  ;;  %v918_v15 = vmul.f32 %v886_v23, %v886_v23  ;;  %v3910_v44 = vadd.f32 %v3909_v61, %v3908_v49 }
  0xed   :  { %v6902_v60 = vpop.f32.mrb[6].mxu1  ;;  %v888_v29 = vsub.f32 %v384_v47, %v6813_v6  ;;  %v4283_v20 = vmul.f32 %v4251_v51, %v4251_v51  ;;  %v3911_v27 = vsel %vm101_vm0, %v3874_v39, 0.0  ;;  %v3875_v18 = vmul.f32 %v3843_v0, %v3843_v0 }
  0xee   :  { %v950_v22 = vadd.f32 %v949_v40, %v948_v4  ;;  %v6908_v10 = vpop.f32.mrb[7].mxu1  ;;  %v4252_v30 = vmul.f32 %v5648_v31, %v4220_v2  ;;  %v919_v32 = vmul.f32 %v887_v1, %v887_v1  ;;  %v955_v37 = vsel %vm101_vm0, %v917_v9, 0.0  ;;  %v6964_v9 = vpop.permute.xlu0 %3667 }
  0xef   :  { %v6917_v43 = vpop.f32.mrb[8].mxu0  ;;  %v889_v40 = vsub.f32 %v4897_v45, %v6793_v28  ;;  %v4221_v46 = vsub.f32 %v6827_v3, %v4059_v8  ;;  %v4318_v50 = vadd.f32 %v4317_v33, %v4316_v13  ;;  %v3844_v55 = vmul.f32 %v5649_v52, %v3812_v14 }
  0xf0   :  { %v952_v53 = vadd.f32 %v951_v5, %v950_v22  ;;  %v6919_v12 = vpop.f32.mrb[9].mxu0  ;;  %v3579_v16 = vcombine.high %v6830_v56, %v6830_v56  ;;  %v957_v23 = vsel %vm101_vm0, %v918_v15, 0.0  ;;  %v920_v49 = vmul.f32 %v888_v29, %v888_v29 }
  0xf1   :  { %v6925_v54 = vpop.f32.mrb[8].mxu1  ;;  %v890_v45 = vsub.f32 %v6888_v59, %v6789_v57  ;;  %v3912_v3 = vadd.f32 %v3911_v27, %v3910_v44  ;;  %v4319_v22 = vsel %vm101_vm0, %v4283_v20, 0.0  ;;  %v3913_v39 = vsel %vm101_vm0, %v3875_v18, 0.0  ;;  %v5650_v59 = vld [vmem:[%s7777_s1 + $0x38] sm:$0xff] }
  0xf2   :  { %v954_v21 = vadd.f32 %v953_v11, %v952_v53  ;;  %v6929_v24 = vpop.f32.mrb[9].mxu1  ;;  %v4284_v35 = vmul.f32 %v4252_v30, %v4252_v30  ;;  %v959_v0 = vsel %vm101_vm0, %v919_v32, 0.0  ;;  %v921_v56 = vmul.f32 %v889_v40, %v889_v40 }
  0xf3   :  { %v6937_v42 = vpop.f32.mrb[10].mxu0  ;;  %v891_v2 = vsub.f32 %v6884_v62, %v6785_v38  ;;  %v4253_v1 = vmul.f32 %v5650_v59, %v4221_v46  ;;  %v3876_v13 = vmul.f32 %v3844_v55, %v3844_v55  ;;  %v3813_v33 = vsub.f32 %v6819_v34, %v6898_v17 }
  0xf4   :  { %v956_v4 = vadd.f32 %v955_v37, %v954_v21  ;;  %v6940_v47 = vpop.f32.mrb[11].mxu0  ;;  %v6972_v14 = vrot.slane %v6858_v19, %v6355_v26  ;;  %v961_v62 = vsel %vm101_vm0, %v920_v49, 0.0  ;;  %v922_v15 = vmul.f32 %v890_v45, %v890_v45  ;;  %v7003_v45 = vpop.permute.xlu0 %3674 }
  0xf5   :  { %v6950_v61 = vpop.f32.mrb[10].mxu1  ;;  %v892_v29 = vsub.f32 %v6908_v10, %v6813_v6  ;;  %v6980_v20 = vrot.slane %v3579_v16, %v6725_v7  ;;  %v893_v27 = vsub.f32 %v6902_v60, %v6793_v28  ;;  %v4320_v18 = vadd.f32 %v4319_v22, %v4318_v50  ;;  %v5651_v50 = vld [vmem:[%s7776_s0 + $0x48] sm:$0xff] }
  0xf6   :  { %v958_v36 = vadd.f32 %v957_v23, %v956_v4  ;;  %v6952_v51 = vpop.f32.mrb[11].mxu1  ;;  %v3914_v31 = vadd.f32 %v3913_v39, %v3912_v3  ;;  %v963_v30 = vsel %vm101_vm0, %v921_v56, 0.0  ;;  %v923_v8 = vmul.f32 %v891_v2, %v891_v2 }
  0xf7   :  { %v6959_v5 = vpop.f32.mrb[12].mxu0  ;;  %7927 = vst [vmem:[#allocation22_spill] sm:$0xff] %v6980_v20  ;;  %v4321_v10 = vsel %vm101_vm0, %v4284_v35, 0.0  ;;  %v4285_v37 = vmul.f32 %v4253_v1, %v4253_v1  ;;  %v895_v40 = vsub.f32 %v6917_v43, %v6785_v38  ;;  %v3915_v60 = vsel %vm101_vm0, %v3876_v13, 0.0  ;;  %v7013_v35 = vpop.permute.xlu1 %4065 }
  0xf8   :  { %v960_v11 = vadd.f32 %v959_v0, %v958_v36  ;;  %v6966_v53 = vpop.f32.mrb[13].mxu0  ;;  %v3845_v52 = vmul.f32 %v5651_v50, %v3813_v33  ;;  %v965_v55 = vsel %vm101_vm0, %v922_v15, 0.0  ;;  %v894_v16 = vsub.f32 %v6919_v12, %v6789_v57 }
  0xf9   :  { %v6977_v44 = vpop.f32.mrb[12].mxu1  ;;  %v924_v23 = vmul.f32 %v892_v29, %v892_v29  ;;  %v7007_v43 = vrot.slane %v6980_v20, %v6355_v26  ;;  %v925_v36 = vmul.f32 %v893_v27, %v893_v27  ;;  %v7011_v39 = vadd.f32 %v4321_v10, %v4320_v18 }
  0xfa   :  { %v962_v21 = vadd.f32 %v961_v62, %v960_v11  ;;  %v6984_v17 = vpop.f32.mrb[13].mxu1  ;;  %v967_v0 = vsel %vm101_vm0, %v923_v8, 0.0  ;;  %v7018_v2 = vadd.f32 %v3915_v60, %v3914_v31  ;;  %v7021_v59 = vsel %vm101_vm0, %v4285_v37, 0.0 }
  0xfb   :  { %v6987_v32 = vpop.f32.mrb[14].mxu0  ;;  %v927_v11 = vmul.f32 %v895_v40, %v895_v40  ;;  %v3877_v15 = vmul.f32 %v3845_v52, %v3845_v52  ;;  %v926_v29 = vmul.f32 %v894_v16, %v894_v16  ;;  %v896_v27 = vsub.f32 %v6940_v47, %v6813_v6 }
  0xfc   :  { %v964_v46 = vadd.f32 %v963_v30, %v962_v21  ;;  %v6992_v4 = vpop.f32.mrb[15].mxu0  ;;  %v969_v21 = vsel %vm101_vm0, %v924_v23, 0.0  ;;  %v971_v30 = vsel %vm101_vm0, %v925_v36, 0.0  ;;  %v897_v8 = vsub.f32 %v6937_v42, %v6793_v28 }
  0xfd   :  { %v7001_v49 = vpop.f32.mrb[14].mxu1  ;;  %v898_v60 = vsub.f32 %v6929_v24, %v6789_v57  ;;  %v975_v16 = vsel %vm101_vm0, %v927_v11, 0.0 }
  0xfe   :  { %v966_v3 = vadd.f32 %v965_v55, %v964_v46  ;;  %v7009_v22 = vpop.f32.mrb[15].mxu1  ;;  %v899_v46 = vsub.f32 %v6925_v54, %v6785_v38  ;;  %v7038_v55 = vpop.permute.xlu0 %3678  ;;  %v928_v54 = vmul.f32 %v896_v27, %v896_v27 }
  0xff   :  { %v4978_v56 = vpop.f32.mrb[16].mxu0  ;;  %v930_v27 = vmul.f32 %v898_v60, %v898_v60 }
 0x100   :  { %v968_v13 = vadd.f32 %v967_v0, %v966_v3  ;;  %v1791_v33 = vsub.f32 %v4978_v56, %v6785_v38  ;;  %v1092_v62 = vpop.f32.mrb[17].mxu0  ;;  %v973_v0 = vsel %vm101_vm0, %v926_v29, 0.0  ;;  %v931_v29 = vmul.f32 %v899_v46, %v899_v46 }
 0x101   :  { %v1790_v18 = vsub.f32 %v1092_v62, %v6789_v57  ;;  %v4992_v31 = vpop.f32.mrb[16].mxu1 }
 0x102   :  { %v970_v10 = vadd.f32 %v969_v21, %v968_v13  ;;  %v1823_v37 = vmul.f32 %v1791_v33, %v1791_v33  ;;  %v1189_v40 = vpop.f32.mrb[17].mxu1  ;;  %v929_v33 = vmul.f32 %v897_v8, %v897_v8  ;;  %v977_v8 = vsel %vm101_vm0, %v928_v54, 0.0 }
 0x103   :  { %v1822_v50 = vmul.f32 %v1790_v18, %v1790_v18  ;;  %v4981_v52 = vpop.f32.mrb[18].mxu0  ;;  %v1794_v47 = vsub.f32 %v1189_v40, %v6789_v57  ;;  %v1795_v18 = vsub.f32 %v4992_v31, %v6785_v38  ;;  %v900_v31 = vsub.f32 %v6952_v51, %v6813_v6 }
 0x104   :  { %v972_v23 = vadd.f32 %v971_v30, %v970_v10  ;;  %v1855_v42 = vsel %vm101_vm0, %v1823_v37, 0.0  ;;  %v1793_v3 = vsub.f32 %v4981_v52, %v6793_v28  ;;  %v1102_v36 = vpop.f32.mrb[19].mxu0  ;;  %v979_v46 = vsel %vm101_vm0, %v929_v33, 0.0 }
 0x105   :  { %v1854_v56 = vsel %vm101_vm0, %v1822_v50, 0.0  ;;  %v1792_v24 = vsub.f32 %v1102_v36, %v6813_v6  ;;  %v4995_v13 = vpop.f32.mrb[18].mxu1  ;;  %v1826_v40 = vmul.f32 %v1794_v47, %v1794_v47  ;;  %v7049_v50 = vsel %vm101_vm0, %v3877_v15, 0.0 }
 0x106   :  { %v974_v62 = vadd.f32 %v973_v0, %v972_v23  ;;  %v1856_v21 = vadd.f32 %v1855_v42, %v1854_v56  ;;  %v1199_v11 = vpop.f32.mrb[19].mxu1  ;;  %v1825_v30 = vmul.f32 %v1793_v3, %v1793_v3  ;;  %v901_v23 = vsub.f32 %v6950_v61, %v6793_v28  ;;  %v7059_v3 = vpop.permute.xlu0 %3682 }
 0x107   :  { %v1824_v10 = vmul.f32 %v1792_v24, %v1792_v24  ;;  %v5006_v37 = vpop.f32.mrb[20].mxu0  ;;  %v1796_v52 = vsub.f32 %v1199_v11, %v6813_v6  ;;  %v1827_v15 = vmul.f32 %v1795_v18, %v1795_v18  ;;  %v1861_v54 = vsel %vm101_vm0, %v1826_v40, 0.0 }
 0x108   :  { %v976_v12 = vadd.f32 %v975_v16, %v974_v62  ;;  %v1286_v1 = vpop.f32.mrb[21].mxu0  ;;  %v1859_v0 = vsel %vm101_vm0, %v1825_v30, 0.0  ;;  %v1797_v61 = vsub.f32 %v4995_v13, %v6793_v28  ;;  %v902_v62 = vsub.f32 %v6966_v53, %v6789_v57 }
 0x109   :  { %v1857_v42 = vsel %vm101_vm0, %v1824_v10, 0.0  ;;  %v7057_v47 = vpop.f32.mrb[20].mxu1  ;;  %v1828_v51 = vmul.f32 %v1796_v52, %v1796_v52  ;;  %v983_v33 = vsel %vm101_vm0, %v931_v29, 0.0  ;;  %v932_v18 = vmul.f32 %v900_v31, %v900_v31 }
 0x10a   :  { %v978_v60 = vadd.f32 %v977_v8, %v976_v12  ;;  %v1858_v16 = vadd.f32 %v1857_v42, %v1856_v21  ;;  %v1383_v36 = vpop.f32.mrb[21].mxu1  ;;  %v3814_v12 = vsub.f32 %v6819_v34, %v6927_v63  ;;  %v981_v21 = vsel %vm101_vm0, %v930_v27, 0.0  ;;  %v7081_v31 = vpop.permute.xlu0 %3686 }
 0x10b   :  { %v5009_v56 = vpop.f32.mrb[22].mxu0  ;;  %v1798_v30 = vsub.f32 %v1286_v1, %v6789_v57  ;;  %v903_v13 = vsub.f32 %v6959_v5, %v6785_v38  ;;  %v933_v8 = vmul.f32 %v901_v23, %v901_v23  ;;  %v1799_v63 = vsub.f32 %v5006_v37, %v6785_v38  ;;  %v5652_v5 = vld [vmem:[%s7776_s0 + $0x50] sm:$0xff] }
 0x10c   :  { %v980_v24 = vadd.f32 %v979_v46, %v978_v60  ;;  %v1860_v11 = vadd.f32 %v1859_v0, %v1858_v16  ;;  %v1296_v10 = vpop.f32.mrb[23].mxu0  ;;  %v1863_v46 = vsel %vm101_vm0, %v1827_v15, 0.0  ;;  %v1829_v60 = vmul.f32 %v1797_v61, %v1797_v61 }
 0x10d   :  { %v7072_v40 = vpop.f32.mrb[22].mxu1  ;;  %v1865_v29 = vsel %vm101_vm0, %v1828_v51, 0.0  ;;  %v934_v1 = vmul.f32 %v902_v62, %v902_v62  ;;  %v3846_v23 = vmul.f32 %v5652_v5, %v3814_v12  ;;  %v985_v15 = vsel %vm101_vm0, %v932_v18, 0.0 }
 0x10e   :  { %v982_v52 = vadd.f32 %v981_v21, %v980_v24  ;;  %v1862_v53 = vadd.f32 %v1861_v54, %v1860_v11  ;;  %v1393_v42 = vpop.f32.mrb[23].mxu1  ;;  %v904_v37 = vsub.f32 %v6992_v4, %v6813_v6  ;;  %v1830_v54 = vmul.f32 %v1798_v30, %v1798_v30 }
 0x10f   :  { %v7079_v27 = vpop.f32.mrb[24].mxu0  ;;  %v1800_v61 = vsub.f32 %v1296_v10, %v6813_v6  ;;  %v935_v24 = vmul.f32 %v903_v13, %v903_v13  ;;  %v987_v62 = vsel %vm101_vm0, %v933_v8, 0.0  ;;  %v905_v12 = vsub.f32 %v6987_v32, %v6793_v28 }
 0x110   :  { %v984_v16 = vadd.f32 %v983_v33, %v982_v52  ;;  %v1864_v0 = vadd.f32 %v1863_v46, %v1862_v53  ;;  %v7083_v20 = vpop.f32.mrb[25].mxu0  ;;  %v1831_v52 = vmul.f32 %v1799_v63, %v1799_v63  ;;  %v1867_v18 = vsel %vm101_vm0, %v1829_v60, 0.0 }
 0x111   :  { %v7092_v51 = vpop.f32.mrb[24].mxu1  ;;  %v1801_v4 = vsub.f32 %v5009_v56, %v6793_v28  ;;  %v989_v10 = vsel %vm101_vm0, %v934_v1, 0.0  ;;  %v906_v13 = vsub.f32 %v6984_v17, %v6789_v57  ;;  %v1832_v32 = vmul.f32 %v1800_v61, %v1800_v61  ;;  %v7112_v56 = vpop.permute.xlu0 %3693 }
 0x112   :  { %v986_v11 = vadd.f32 %v985_v15, %v984_v16  ;;  %v1866_v33 = vadd.f32 %v1865_v29, %v1864_v0  ;;  %v7095_v21 = vpop.f32.mrb[25].mxu1  ;;  %v936_v29 = vmul.f32 %v904_v37, %v904_v37  ;;  %v1869_v16 = vsel %vm101_vm0, %v1830_v54, 0.0 }
 0x113   :  { %v7101_v30 = vpop.f32.mrb[26].mxu0  ;;  %v1802_v63 = vsub.f32 %v1383_v36, %v6789_v57  ;;  %v991_v0 = vsel %vm101_vm0, %v935_v24, 0.0  ;;  %v3878_v15 = vmul.f32 %v3846_v23, %v3846_v23  ;;  %v937_v17 = vmul.f32 %v905_v12, %v905_v12 }
 0x114   :  { %v988_v53 = vadd.f32 %v987_v62, %v986_v11  ;;  %v1868_v8 = vadd.f32 %v1867_v18, %v1866_v33  ;;  %v7106_v46 = vpop.f32.mrb[27].mxu0  ;;  %v1871_v11 = vsel %vm101_vm0, %v1831_v52, 0.0  ;;  %v1833_v37 = vmul.f32 %v1801_v4, %v1801_v4 }
 0x115   :  { %v7110_v60 = vpop.f32.mrb[26].mxu1  ;;  %v1803_v54 = vsub.f32 %v7057_v47, %v6785_v38  ;;  %v938_v33 = vmul.f32 %v906_v13, %v906_v13  ;;  %v3918_v24 = vadd.f32 %v7049_v50, %v7018_v2  ;;  %v993_v23 = vsel %vm101_vm0, %v936_v29, 0.0 }
 0x116   :  { %v990_v1 = vadd.f32 %v989_v10, %v988_v53  ;;  %v1870_v5 = vadd.f32 %v1869_v16, %v1868_v8  ;;  %v7115_v62 = vpop.f32.mrb[27].mxu1  ;;  %v1873_v12 = vsel %vm101_vm0, %v1832_v32, 0.0  ;;  %v1834_v53 = vmul.f32 %v1802_v63, %v1802_v63  ;;  %v7142_v63 = vpop.permute.xlu0 %3697 }
 0x117   :  { %v7120_v61 = vpop.f32.mrb[28].mxu0  ;;  %v1804_v52 = vsub.f32 %v1393_v42, %v6813_v6  ;;  %v3919_v16 = vsel %vm101_vm0, %v3878_v15, 0.0  ;;  %v3815_v13 = vsub.f32 %v6819_v34, %v6964_v9  ;;  %v995_v2 = vsel %vm101_vm0, %v937_v17, 0.0 }
 0x118   :  { %v992_v36 = vadd.f32 %v991_v0, %v990_v1  ;;  %v1872_v18 = vadd.f32 %v1871_v11, %v1870_v5  ;;  %v7124_v10 = vpop.f32.mrb[29].mxu0  ;;  %v1875_v50 = vsel %vm101_vm0, %v1833_v37, 0.0  ;;  %v1835_v29 = vmul.f32 %v1803_v54, %v1803_v54 }
 0x119   :  { %v7129_v4 = vpop.f32.mrb[28].mxu1  ;;  %v1805_v32 = vsub.f32 %v7072_v40, %v6793_v28  ;;  %v907_v1 = vsub.f32 %v6977_v44, %v6785_v38  ;;  %v997_v34 = vsel %vm101_vm0, %v938_v33, 0.0  ;;  %v908_v17 = vsub.f32 %v7009_v22, %v6813_v6  ;;  %v5653_v33 = vld [vmem:[%s7776_s0 + $0x58] sm:$0xff] }
 0x11a   :  { %v994_v47 = vadd.f32 %v993_v23, %v992_v36  ;;  %v1874_v8 = vadd.f32 %v1873_v12, %v1872_v18  ;;  %v7134_v0 = vpop.f32.mrb[29].mxu1  ;;  %v1877_v11 = vsel %vm101_vm0, %v1834_v53, 0.0  ;;  %v1806_v40 = vsub.f32 %v7083_v20, %v6789_v57 }
 0x11b   :  { %v7140_v42 = vpop.f32.mrb[30].mxu0  ;;  %v1836_v37 = vmul.f32 %v1804_v52, %v1804_v52  ;;  %v1807_v44 = vsub.f32 %v7079_v27, %v6785_v38  ;;  %v3847_v23 = vmul.f32 %v5653_v33, %v3815_v13  ;;  %v7165_v22 = vadd.f32 %v7021_v59, %v7011_v39 }
 0x11c   :  { %v996_v5 = vadd.f32 %v995_v2, %v994_v47  ;;  %v1876_v9 = vadd.f32 %v1875_v50, %v1874_v8  ;;  %v7147_v15 = vpop.f32.mrb[31].mxu0  ;;  %v1879_v20 = vsel %vm101_vm0, %v1835_v29, 0.0  ;;  %v1837_v53 = vmul.f32 %v1805_v32, %v1805_v32  ;;  %v5654_v8 = vld [vmem:[%s7777_s1 + $0x40] sm:$0xff]  ;;  %v7183_v32 = vpop.permute.xlu0 %3701 }
 0x11d   :  { %v7154_v54 = vpop.f32.mrb[30].mxu1  ;;  %v3816_v52 = vsub.f32 %v6841_v58, %v7003_v45  ;;  %v939_v47 = vmul.f32 %v907_v1, %v907_v1  ;;  %v909_v27 = vsub.f32 %v7001_v49, %v6793_v28  ;;  %v7928_v13 = vsub.f32 %v6822_v48, %v7013_v35 }
 0x11e   :  { %v998_v36 = vadd.f32 %v997_v34, %v996_v5  ;;  %v1878_v18 = vadd.f32 %v1877_v11, %v1876_v9  ;;  %v7161_v12 = vpop.f32.mrb[31].mxu1  ;;  %v1838_v59 = vmul.f32 %v1806_v40, %v1806_v40  ;;  %v3920_v50 = vadd.f32 %v3919_v16, %v3918_v24  ;;  %v5655_v24 = vld [vmem:[%s7776_s0 + $0x60] sm:$0xff] }
 0x11f   :  { %v7178_v2 = vmul.f32 %v5654_v8, %v7928_v13  ;;  %v1881_v29 = vsel %vm101_vm0, %v1836_v37, 0.0  ;;  %v1808_v45 = vsub.f32 %v7106_v46, %v6813_v6  ;;  %v940_v49 = vmul.f32 %v908_v17, %v908_v17 }
 0x120   :  { %v1880_v39 = vadd.f32 %v1879_v20, %v1878_v18  ;;  %v1839_v1 = vmul.f32 %v1807_v44, %v1807_v44  ;;  %v3879_v34 = vmul.f32 %v3847_v23, %v3847_v23  ;;  %v1883_v9 = vsel %vm101_vm0, %v1837_v53, 0.0  ;;  %v7201_v20 = vpop.permute.xlu1 %4069  ;;  %v7204_v13 = vpop.permute.xlu0 %3705 }
 0x121   :  { %v1811_v35 = vsub.f32 %v7092_v51, %v6785_v38  ;;  %v1809_v11 = vsub.f32 %v7101_v30, %v6793_v28  ;;  %v3848_v16 = vmul.f32 %v5655_v24, %v3816_v52  ;;  %v999_v46 = vsel %vm101_vm0, %v939_v47, 0.0 }
 0x122   :  { %v1882_v5 = vadd.f32 %v1881_v29, %v1880_v39  ;;  %v941_v40 = vmul.f32 %v909_v27, %v909_v27  ;;  %v3817_v37 = vsub.f32 %v6841_v58, %v7038_v55  ;;  %v1885_v44 = vsel %vm101_vm0, %v1838_v59, 0.0 }
 0x123   :  { %v1810_v51 = vsub.f32 %v7095_v21, %v6789_v57  ;;  %v1840_v18 = vmul.f32 %v1808_v45, %v1808_v45  ;;  %v1000_v33 = vadd.f32 %v999_v46, %v998_v36  ;;  %v1001_v30 = vsel %vm101_vm0, %v940_v49, 0.0  ;;  %v5656_v21 = vld [vmem:[%s7776_s0 + $0x68] sm:$0xff] }
 0x124   :  { %v1884_v17 = vadd.f32 %v1883_v9, %v1882_v5  ;;  %v1887_v23 = vsel %vm101_vm0, %v1839_v1, 0.0  ;;  %v3921_v53 = vsel %vm101_vm0, %v3879_v34, 0.0  ;;  %v1843_v47 = vmul.f32 %v1811_v35, %v1811_v35  ;;  %v7225_v46 = vpop.permute.xlu1 %4073 }
 0x125   :  { %v1841_v27 = vmul.f32 %v1809_v11, %v1809_v11  ;;  %v3880_v8 = vmul.f32 %v3848_v16, %v3848_v16  ;;  %v1002_v55 = vadd.f32 %v1001_v30, %v1000_v33  ;;  %v3849_v36 = vmul.f32 %v5656_v21, %v3817_v37  ;;  %v7235_v33 = vpop.permute.xlu0 %3712 }
 0x126   :  { %v1886_v52 = vadd.f32 %v1885_v44, %v1884_v17  ;;  %v3818_v59 = vsub.f32 %v6841_v58, %v7059_v3  ;;  %v1003_v29 = vsel %vm101_vm0, %v941_v40, 0.0  ;;  %v1842_v45 = vmul.f32 %v1810_v51, %v1810_v51 }
 0x127   :  { %v1889_v49 = vsel %vm101_vm0, %v1840_v18, 0.0  ;;  %v1812_v1 = vsub.f32 %v7115_v62, %v6813_v6  ;;  %v1004_v5 = vadd.f32 %v1003_v29, %v1002_v55  ;;  %v3922_v34 = vadd.f32 %v3921_v53, %v3920_v50 }
 0x128   :  { %v1888_v39 = vadd.f32 %v1887_v23, %v1886_v52  ;;  %v1815_v35 = vsub.f32 %v7120_v61, %v6785_v38  ;;  %v1813_v11 = vsub.f32 %v7110_v60, %v6793_v28  ;;  %v4223_v3 = vsub.f32 %v6822_v48, %v7201_v20  ;;  %v5657_v60 = vld [vmem:[%s7776_s0 + $0x70] sm:$0xff]  ;;  %v5658_v52 = vld [vmem:[%s7776_s0 + $0x78] sm:$0xff] }
 0x129   :  { %v1891_v24 = vsel %vm101_vm0, %v1841_v27, 0.0  ;;  %v3923_v16 = vsel %vm101_vm0, %v3880_v8, 0.0  ;;  %1005 = vadd.xlane.f32.xlu0 %v1004_v5  ;;  %v3819_v62 = vsub.f32 %v6841_v58, %v7081_v31  ;;  %v1814_v61 = vsub.f32 %v7124_v10, %v6789_v57 }
 0x12a   :  { %v1890_v9 = vadd.f32 %v1889_v49, %v1888_v39  ;;  %v3881_v40 = vmul.f32 %v3849_v36, %v3849_v36  ;;  %v3850_v17 = vmul.f32 %v5657_v60, %v3818_v59  ;;  %v1895_v44 = vsel %vm101_vm0, %v1843_v47, 0.0 }
 0x12b   :  { %v1893_v51 = vsel %vm101_vm0, %v1842_v45, 0.0  ;;  %v1844_v18 = vmul.f32 %v1812_v1, %v1812_v1  ;;  %v3924_v30 = vadd.f32 %v3923_v16, %v3922_v34  ;;  %v1847_v23 = vmul.f32 %v1815_v35, %v1815_v35 }
 0x12c   :  { %v1892_v50 = vadd.f32 %v1891_v24, %v1890_v9  ;;  %v5090_v37 = vpop.f32.mrb[32].mxu0  ;;  %v1845_v10 = vmul.f32 %v1813_v11, %v1813_v11  ;;  %v3851_v27 = vmul.f32 %v5658_v52, %v3819_v62  ;;  %v3820_v47 = vsub.f32 %v6972_v14, %v7112_v56  ;;  %v7248_v56 = vpop.permute.xlu1 %4077 }
 0x12d   :  { %v2608_v58 = vsub.f32 %v5090_v37, %v6785_v38  ;;  %v1993_v31 = vpop.f32.mrb[33].mxu0  ;;  %v1846_v21 = vmul.f32 %v1814_v61, %v1814_v61  ;;  %v3925_v36 = vsel %vm101_vm0, %v3881_v40, 0.0  ;;  %v3882_v29 = vmul.f32 %v3850_v17, %v3850_v17  ;;  %v7258_v37 = vpop.permute.xlu0 %3716 }
 0x12e   :  { %v1894_v20 = vadd.f32 %v1893_v51, %v1892_v50  ;;  %v5104_v53 = vpop.f32.mrb[32].mxu1  ;;  %v2607_v55 = vsub.f32 %v1993_v31, %v6789_v57  ;;  %v1897_v49 = vsel %vm101_vm0, %v1844_v18, 0.0  ;;  %v1816_v1 = vsub.f32 %v7147_v15, %v6813_v6  ;;  %v5659_v15 = vld [vmem:[%s7776_s0 + $0x80] sm:$0xff]  ;;  %v5660_v31 = vld [vmem:[%s7777_s1 + $0x48] sm:$0xff] }
 0x12f   :  { %v2640_v8 = vmul.f32 %v2608_v58, %v2608_v58  ;;  %v2078_v39 = vpop.f32.mrb[33].mxu1  ;;  %v1899_v35 = vsel %vm101_vm0, %v1845_v10, 0.0  ;;  %v1817_v24 = vsub.f32 %v7140_v42, %v6793_v28  ;;  %v3926_v50 = vadd.f32 %v3925_v36, %v3924_v30 }
 0x130   :  { %v1896_v59 = vadd.f32 %v1895_v44, %v1894_v20  ;;  %v5093_v45 = vpop.f32.mrb[34].mxu0  ;;  %v2639_v34 = vmul.f32 %v2607_v55, %v2607_v55  ;;  %v3883_v61 = vmul.f32 %v3851_v27, %v3851_v27  ;;  %v3852_v40 = vmul.f32 %v5659_v15, %v3820_v47 }
 0x131   :  { %v2672_v5 = vsel %vm101_vm0, %v2640_v8, 0.0  ;;  %v2003_v9 = vpop.f32.mrb[35].mxu0  ;;  %v2610_v16 = vsub.f32 %v5093_v45, %v6793_v28  ;;  %v3927_v51 = vsel %vm101_vm0, %v3882_v29, 0.0  ;;  %v3821_v42 = vsub.f32 %v6972_v14, %v7142_v63 }
 0x132   :  { %v1898_v11 = vadd.f32 %v1897_v49, %v1896_v59  ;;  %v5107_v62 = vpop.f32.mrb[34].mxu1  ;;  %v2671_v60 = vsel %vm101_vm0, %v2639_v34, 0.0  ;;  %v4286_v58 = vmul.f32 %v7178_v2, %v7178_v2  ;;  %v4255_v30 = vmul.f32 %v5660_v31, %v4223_v3  ;;  %v7272_v2 = vpop.permute.xlu1 %4084  ;;  %v5661_v3 = vld [vmem:[%s7776_s0 + $0x88] sm:$0xff] }
 0x133   :  { %v2088_v17 = vpop.f32.mrb[35].mxu1  ;;  %v2673_v18 = vadd.f32 %v2672_v5, %v2671_v60  ;;  %v1901_v10 = vsel %vm101_vm0, %v1846_v21, 0.0  ;;  %v1848_v20 = vmul.f32 %v1816_v1, %v1816_v1  ;;  %v1849_v52 = vmul.f32 %v1817_v24, %v1817_v24 }
 0x134   :  { %v1900_v44 = vadd.f32 %v1899_v35, %v1898_v11  ;;  %v2642_v47 = vmul.f32 %v2610_v16, %v2610_v16  ;;  %v2609_v8 = vsub.f32 %v2003_v9, %v6813_v6  ;;  %v1903_v55 = vsel %vm101_vm0, %v1847_v23, 0.0  ;;  %v7282_v9 = vpop.permute.xlu0 %3720 }
 0x135   :  { %v3928_v36 = vadd.f32 %v3927_v51, %v3926_v50  ;;  %v3929_v63 = vsel %vm101_vm0, %v3883_v61, 0.0  ;;  %v3884_v59 = vmul.f32 %v3852_v40, %v3852_v40  ;;  %v3853_v21 = vmul.f32 %v5661_v3, %v3821_v42 }
 0x136   :  { %v1902_v27 = vadd.f32 %v1901_v10, %v1900_v44  ;;  %v2641_v45 = vmul.f32 %v2609_v8, %v2609_v8  ;;  %v3822_v49 = vsub.f32 %v6972_v14, %v7183_v32  ;;  %v4325_v1 = vsel %vm101_vm0, %v4286_v58, 0.0 }
 0x137   :  { %v4287_v5 = vmul.f32 %v4255_v30, %v4255_v30  ;;  %v1905_v23 = vsel %vm101_vm0, %v1848_v20, 0.0  ;;  %v2612_v34 = vsub.f32 %v5104_v53, %v6785_v38  ;;  %v1907_v35 = vsel %vm101_vm0, %v1849_v52, 0.0  ;;  %v5662_v53 = vld [vmem:[%s7776_s0 + $0x90] sm:$0xff]  ;;  %v7302_v52 = vpop.permute.xlu1 %4088 }
 0x138   :  { %v1904_v29 = vadd.f32 %v1903_v55, %v1902_v27  ;;  %v2676_v24 = vsel %vm101_vm0, %v2642_v47, 0.0  ;;  %v2674_v16 = vsel %vm101_vm0, %v2641_v45, 0.0  ;;  %v3930_v50 = vadd.f32 %v3929_v63, %v3928_v36  ;;  %v7317_v36 = vpop.permute.xlu0 %3724 }
 0x139   :  { %v3931_v61 = vsel %vm101_vm0, %v3884_v59, 0.0  ;;  %v2675_v32 = vadd.f32 %v2674_v16, %v2673_v18  ;;  %v2611_v15 = vsub.f32 %v2078_v39, %v6789_v57  ;;  %v3885_v60 = vmul.f32 %v3853_v21, %v3853_v21  ;;  %v5663_v21 = vld [vmem:[%s7776_s0 + $0x98] sm:$0xff] }
 0x13a   :  { %v1906_v11 = vadd.f32 %v1905_v23, %v1904_v29  ;;  %v3854_v44 = vmul.f32 %v5662_v53, %v3822_v49  ;;  %v2614_v51 = vsub.f32 %v5107_v62, %v6793_v28  ;;  %v2644_v58 = vmul.f32 %v2612_v34, %v2612_v34  ;;  %v5664_v23 = vld [vmem:[%s7777_s1 + $0x50] sm:$0xff] }
 0x13b   :  { %v2643_v31 = vmul.f32 %v2611_v15, %v2611_v15  ;;  %v2677_v30 = vadd.f32 %v2676_v24, %v2675_v32  ;;  %v3823_v10 = vsub.f32 %v6972_v14, %v7204_v13  ;;  %v7298_v39 = vadd.f32 %v4325_v1, %v7165_v22 }
 0x13c   :  { %v7289_v40 = vadd.f32 %v1907_v35, %v1906_v11  ;;  %v5118_v42 = vpop.f32.mrb[36].mxu0  ;;  %v4224_v20 = vsub.f32 %v6822_v48, %v7225_v46  ;;  %v2613_v27 = vsub.f32 %v2088_v17, %v6813_v6  ;;  %v7929_v62 = vcombine.high %v6858_v19, %v6858_v19 }
 0x13d   :  { %v2163_v18 = vpop.f32.mrb[37].mxu0  ;;  %v7314_v14 = vsel %vm101_vm0, %v4287_v5, 0.0  ;;  %v3932_v22 = vadd.f32 %v3931_v61, %v3930_v50  ;;  %v2678_v13 = vsel %vm101_vm0, %v2643_v31, 0.0  ;;  %v2646_v55 = vmul.f32 %v2614_v51, %v2614_v51 }
 0x13e   :  { %v7305_v47 = vpop.f32.mrb[36].mxu1  ;;  %v7311_v8 = vrot.slane %v7929_v62, %v6355_v26  ;;  %v3933_v17 = vsel %vm101_vm0, %v3885_v60, 0.0  ;;  %v3886_v63 = vmul.f32 %v3854_v44, %v3854_v44  ;;  %v2679_v59 = vadd.f32 %v2678_v13, %v2677_v30  ;;  %v7341_v60 = vpop.permute.xlu1 %4092 }
 0x13f   :  { %v2248_v46 = vpop.f32.mrb[37].mxu1  ;;  %v3824_v29 = vsub.f32 %v7007_v43, %v7235_v33  ;;  %v2680_v3 = vsel %vm101_vm0, %v2644_v58, 0.0  ;;  %v3855_v45 = vmul.f32 %v5663_v21, %v3823_v10  ;;  %v2645_v49 = vmul.f32 %v2613_v27, %v2613_v27  ;;  %v7350_v30 = vpop.permute.xlu0 %3731 }
 0x140   :  { %v5121_v19 = vpop.f32.mrb[38].mxu0  ;;  %v2616_v1 = vsub.f32 %v5118_v42, %v6785_v38  ;;  %v4256_v34 = vmul.f32 %v5664_v23, %v4224_v20  ;;  %v4225_v33 = vsub.f32 %v6822_v48, %v7248_v56  ;;  %v2681_v35 = vadd.f32 %v2680_v3, %v2679_v59  ;;  %v5665_v56 = vld [vmem:[%s7776_s0 + $0xa0] sm:$0xff] }
 0x141   :  { %v2173_v5 = vpop.f32.mrb[39].mxu0  ;;  %v2615_v11 = vsub.f32 %v2163_v18, %v6789_v57  ;;  %v1818_v16 = vsub.f32 %v7134_v0, %v6789_v57  ;;  %v3934_v50 = vadd.f32 %v3933_v17, %v3932_v22  ;;  %v2684_v61 = vsel %vm101_vm0, %v2646_v55, 0.0  ;;  %v5666_v18 = vld [vmem:[%s7777_s1 + $0x58] sm:$0xff] }
 0x142   :  { %v7333_v24 = vpop.f32.mrb[38].mxu1  ;;  %v2682_v32 = vsel %vm101_vm0, %v2645_v49, 0.0  ;;  %v3935_v53 = vsel %vm101_vm0, %v3886_v63, 0.0  ;;  %v3856_v44 = vmul.f32 %v5665_v56, %v3824_v29  ;;  %v3887_v42 = vmul.f32 %v3855_v45, %v3855_v45  ;;  %v7372_v45 = vpop.permute.xlu1 %4096 }
 0x143   :  { %v7339_v15 = vpop.f32.mrb[39].mxu1  ;;  %v2683_v48 = vadd.f32 %v2682_v32, %v2681_v35  ;;  %v2647_v51 = vmul.f32 %v2615_v11, %v2615_v11  ;;  %v2648_v0 = vmul.f32 %v2616_v1, %v2616_v1  ;;  %v3825_v58 = vsub.f32 %v7007_v43, %v7258_v37 }
 0x144   :  { %v2618_v31 = vsub.f32 %v5121_v19, %v6793_v28  ;;  %v7352_v10 = vmul.f32 %v4256_v34, %v4256_v34  ;;  %v7357_v20 = vmul.f32 %v5666_v18, %v4225_v33  ;;  %v1819_v27 = vsub.f32 %v7129_v4, %v6785_v38  ;;  %v5667_v4 = vld [vmem:[%s7776_s0 + $0xa8] sm:$0xff] }
 0x145   :  { %v2685_v62 = vadd.f32 %v2684_v61, %v2683_v48  ;;  %v1850_v22 = vmul.f32 %v1818_v16, %v1818_v16  ;;  %v1820_v37 = vsub.f32 %v7161_v12, %v6813_v6  ;;  %v3936_v13 = vadd.f32 %v3935_v53, %v3934_v50  ;;  %v7380_v16 = vpop.permute.xlu0 %3735 }
 0x146   :  { %v2686_v55 = vsel %vm101_vm0, %v2647_v51, 0.0  ;;  %v3888_v17 = vmul.f32 %v3856_v44, %v3856_v44  ;;  %v2650_v59 = vmul.f32 %v2618_v31, %v2618_v31  ;;  %v2617_v29 = vsub.f32 %v2173_v5, %v6813_v6 }
 0x147   :  { %v2687_v63 = vadd.f32 %v2686_v55, %v2685_v62  ;;  %v3937_v19 = vsel %vm101_vm0, %v3887_v42, 0.0  ;;  %v2688_v3 = vsel %vm101_vm0, %v2648_v0, 0.0  ;;  %v3857_v21 = vmul.f32 %v5667_v4, %v3825_v58 }
 0x148   :  { %v3826_v12 = vsub.f32 %v7007_v43, %v7282_v9  ;;  %v1821_v49 = vsub.f32 %v7154_v54, %v6793_v28  ;;  %v2649_v1 = vmul.f32 %v2617_v29, %v2617_v29  ;;  %v2620_v5 = vsub.f32 %v7305_v47, %v6785_v38  ;;  %v5668_v47 = vld [vmem:[%s7776_s0 + $0xb0] sm:$0xff] }
 0x149   :  { %v2689_v23 = vadd.f32 %v2688_v3, %v2687_v63  ;;  %v1851_v34 = vmul.f32 %v1819_v27, %v1819_v27  ;;  %v1909_v33 = vsel %vm101_vm0, %v1850_v22, 0.0  ;;  %v1852_v35 = vmul.f32 %v1820_v37, %v1820_v37 }
 0x14a   :  { %v2619_v11 = vsub.f32 %v2248_v46, %v6789_v57  ;;  %v3938_v50 = vadd.f32 %v3937_v19, %v3936_v13  ;;  %v3939_v9 = vsel %vm101_vm0, %v3888_v17, 0.0  ;;  %v2692_v61 = vsel %vm101_vm0, %v2650_v59, 0.0  ;;  %v7398_v13 = vpop.permute.xlu1 %4103 }
 0x14b   :  { %v2690_v54 = vsel %vm101_vm0, %v2649_v1, 0.0  ;;  %v3889_v53 = vmul.f32 %v3857_v21, %v3857_v21  ;;  %v3858_v56 = vmul.f32 %v5668_v47, %v3826_v12  ;;  %v4226_v46 = vsub.f32 %v6846_v25, %v7272_v2  ;;  %v7407_v21 = vpop.permute.xlu0 %3739 }
 0x14c   :  { %v5146_v32 = vpop.f32.mrb[40].mxu0  ;;  %v2691_v48 = vadd.f32 %v2690_v54, %v2689_v23  ;;  %v2651_v44 = vmul.f32 %v2619_v11, %v2619_v11  ;;  %v1853_v42 = vmul.f32 %v1821_v49, %v1821_v49  ;;  %v2652_v0 = vmul.f32 %v2620_v5, %v2620_v5  ;;  %v5670_v54 = vld [vmem:[%s7777_s1 + $0x60] sm:$0xff] }
 0x14d   :  { %v2333_v51 = vpop.f32.mrb[41].mxu0  ;;  %v1910_v58 = vadd.f32 %v1909_v33, %v7289_v40  ;;  %v1911_v18 = vsel %vm101_vm0, %v1851_v34, 0.0  ;;  %v1913_v27 = vsel %vm101_vm0, %v1852_v35, 0.0  ;;  %v3940_v55 = vadd.f32 %v3939_v9, %v3938_v50 }
 0x14e   :  { %v7391_v31 = vpop.f32.mrb[40].mxu1  ;;  %v2693_v62 = vadd.f32 %v2692_v61, %v2691_v48  ;;  %v2694_v22 = vsel %vm101_vm0, %v2651_v44, 0.0  ;;  %v3827_v2 = vsub.f32 %v7007_v43, %v7317_v36  ;;  %v2622_v40 = vsub.f32 %v7333_v24, %v6793_v28  ;;  %v5669_v24 = vld [vmem:[%s7776_s0 + $0xb8] sm:$0xff]  ;;  %v7432_v47 = vpop.permute.xlu1 %4107  ;;  %v5671_v44 = vld [vmem:[%s7776_s0 + $0xc0] sm:$0xff] }
 0x14f   :  { %v7396_v37 = vpop.f32.mrb[41].mxu1  ;;  %v1912_v17 = vadd.f32 %v1911_v18, %v1910_v58  ;;  %v3941_v59 = vsel %vm101_vm0, %v3889_v53, 0.0  ;;  %v3890_v29 = vmul.f32 %v3858_v56, %v3858_v56  ;;  %v2621_v3 = vsub.f32 %v7339_v15, %v6813_v6 }
 0x150   :  { %v5149_v63 = vpop.f32.mrb[42].mxu0  ;;  %v2695_v19 = vadd.f32 %v2694_v22, %v2693_v62  ;;  %v2696_v12 = vsel %vm101_vm0, %v2652_v0, 0.0  ;;  %v1915_v1 = vsel %vm101_vm0, %v1853_v42, 0.0  ;;  %v2654_v43 = vmul.f32 %v2622_v40, %v2622_v40  ;;  %v7443_v42 = vpop.permute.xlu0 %3743 }
 0x151   :  { %v2343_v4 = vpop.f32.mrb[43].mxu0  ;;  %v1914_v49 = vadd.f32 %v1913_v27, %v1912_v17  ;;  %v3859_v23 = vmul.f32 %v5669_v24, %v3827_v2  ;;  %v2653_v5 = vmul.f32 %v2621_v3, %v2621_v3  ;;  %v3828_v15 = vsub.f32 %v7311_v8, %v7350_v30 }
 0x152   :  { %v7411_v36 = vpop.f32.mrb[42].mxu1  ;;  %v2697_v34 = vadd.f32 %v2696_v12, %v2695_v19  ;;  %v4328_v35 = vadd.f32 %v7314_v14, %v7298_v39  ;;  %v4329_v11 = vsel %vm101_vm0, %v7352_v10, 0.0  ;;  %v2624_v9 = vsub.f32 %v5146_v32, %v6785_v38 }
 0x153   :  { %v7418_v33 = vpop.f32.mrb[43].mxu1  ;;  %v1916_v50 = vadd.f32 %v1915_v1, %v1914_v49  ;;  %v4289_v61 = vmul.f32 %v7357_v20, %v7357_v20  ;;  %v4258_v53 = vmul.f32 %v5670_v54, %v4226_v46  ;;  %v2700_v30 = vsel %vm101_vm0, %v2654_v43, 0.0  ;;  %v7454_v49 = vpop.permute.xlu1 %4111 }
 0x154   :  { %v2698_v48 = vsel %vm101_vm0, %v2653_v5, 0.0  ;;  %v3942_v39 = vadd.f32 %v3941_v59, %v3940_v55  ;;  %v2623_v10 = vsub.f32 %v2333_v51, %v6789_v57  ;;  %v7437_v32 = vrot.slane %v6853_v41, %v6725_v7 }
 0x155   :  { %1917 = vadd.xlane.f32.xlu1 %v1916_v50  ;;  %v2699_v14 = vadd.f32 %v2698_v48, %v2697_v34  ;;  %v3943_v20 = vsel %vm101_vm0, %v3890_v29, 0.0  ;;  %v3891_v56 = vmul.f32 %v3859_v23, %v3859_v23  ;;  %v3860_v46 = vmul.f32 %v5671_v44, %v3828_v15  ;;  %v7465_v15 = vpop.permute.xlu0 %3750 }
 0x156   :  { %v4330_v0 = vadd.f32 %v4329_v11, %v4328_v35  ;;  %v2656_v58 = vmul.f32 %v2624_v9, %v2624_v9  ;;  %v2655_v18 = vmul.f32 %v2623_v10, %v2623_v10  ;;  %v4331_v51 = vsel %vm101_vm0, %v4289_v61, 0.0  ;;  %v5673_v11 = vld [vmem:[%s7777_s1 + $0x68] sm:$0xff] }
 0x157   :  { %v2701_v27 = vadd.f32 %v2700_v30, %v2699_v14  ;;  %v4290_v62 = vmul.f32 %v4258_v53, %v4258_v53  ;;  %v3829_v22 = vsub.f32 %v7311_v8, %v7380_v16  ;;  %v2626_v55 = vsub.f32 %v5149_v63, %v6793_v28  ;;  %v5672_v16 = vld [vmem:[%s7776_s0 + $0xc8] sm:$0xff] }
 0x158   :  { %v4227_v17 = vsub.f32 %v6846_v25, %v7302_v52  ;;  %v3944_v2 = vadd.f32 %v3943_v20, %v3942_v39  ;;  %v2702_v40 = vsel %vm101_vm0, %v2655_v18, 0.0  ;;  %v2625_v59 = vsub.f32 %v2343_v4, %v6813_v6  ;;  %v5674_v20 = vld [vmem:[%s7776_s0 + $0xd0] sm:$0xff] }
 0x159   :  { %v3945_v29 = vsel %vm101_vm0, %v3891_v56, 0.0  ;;  %v3892_v19 = vmul.f32 %v3860_v46, %v3860_v46  ;;  %v2703_v3 = vadd.f32 %v2702_v40, %v2701_v27  ;;  %v2658_v12 = vmul.f32 %v2626_v55, %v2626_v55 }
 0x15a   :  { %v2704_v1 = vsel %vm101_vm0, %v2656_v58, 0.0  ;;  %v3861_v63 = vmul.f32 %v5672_v16, %v3829_v22  ;;  %v2657_v52 = vmul.f32 %v2625_v59, %v2625_v59  ;;  %v3830_v43 = vsub.f32 %v7311_v8, %v7407_v21  ;;  %v7493_v22 = vpop.permute.xlu1 %4115 }
 0x15b   :  { %v4332_v4 = vadd.f32 %v4331_v51, %v4330_v0  ;;  %v4333_v23 = vsel %vm101_vm0, %v4290_v62, 0.0  ;;  %v2705_v5 = vadd.f32 %v2704_v1, %v2703_v3  ;;  %v2628_v34 = vsub.f32 %v7391_v31, %v6785_v38  ;;  %v5675_v51 = vld [vmem:[%s7777_s1 + $0x70] sm:$0xff]  ;;  %v3755_v3 = vpop.permute.xlu0 %3754 }
 0x15c   :  { %v5174_v24 = vpop.f32.mrb[44].mxu0  ;;  %v4259_v50 = vmul.f32 %v5673_v11, %v4227_v17  ;;  %v4228_v9 = vsub.f32 %v6846_v25, %v7341_v60  ;;  %v2708_v21 = vsel %vm101_vm0, %v2658_v12, 0.0  ;;  %v2706_v61 = vsel %vm101_vm0, %v2657_v52, 0.0  ;;  %v7930_v52 = vld [vmem:[#allocation22_spill] sm:$0xff] }
 0x15d   :  { %v2503_v35 = vpop.f32.mrb[45].mxu0  ;;  %v7478_v31 = vrot.slane %v7437_v32, %v6355_v26  ;;  %v3946_v53 = vadd.f32 %v3945_v29, %v3944_v2  ;;  %v2707_v30 = vadd.f32 %v2706_v61, %v2705_v5  ;;  %v2627_v48 = vsub.f32 %v7396_v37, %v6789_v57 }
 0x15e   :  { %v7474_v54 = vpop.f32.mrb[44].mxu1  ;;  %v3989_v60 = vcombine.high %v6853_v41, %v6853_v41  ;;  %v3947_v14 = vsel %vm101_vm0, %v3892_v19, 0.0  ;;  %v3893_v10 = vmul.f32 %v3861_v63, %v3861_v63  ;;  %v3862_v56 = vmul.f32 %v5674_v20, %v3830_v43 }
 0x15f   :  { %v7482_v39 = vpop.f32.mrb[45].mxu1  ;;  %v4334_v46 = vadd.f32 %v4333_v23, %v4332_v4  ;;  %v2660_v0 = vmul.f32 %v2628_v34, %v2628_v34  ;;  %v2659_v58 = vmul.f32 %v2627_v48, %v2627_v48  ;;  %v2709_v18 = vadd.f32 %v2708_v21, %v2707_v30  ;;  %v5677_v21 = vld [vmem:[%s7777_s1 + $0x78] sm:$0xff] }
 0x160   :  { %v5177_v44 = vpop.f32.mrb[46].mxu0  ;;  %v4291_v37 = vmul.f32 %v4259_v50, %v4259_v50  ;;  %v4260_v62 = vmul.f32 %v5675_v51, %v4228_v9  ;;  %v3831_v55 = vsub.f32 %v7311_v8, %v7443_v42  ;;  %v2630_v17 = vsub.f32 %v7411_v36, %v6793_v28  ;;  %v5678_v51 = vld [vmem:[%s7777_s1 + $0x80] sm:$0xff] }
 0x161   :  { %v2513_v27 = vpop.f32.mrb[47].mxu0  ;;  %v4229_v40 = vsub.f32 %v6846_v25, %v7372_v45  ;;  %v3948_v59 = vadd.f32 %v3947_v14, %v3946_v53  ;;  %v2710_v29 = vsel %vm101_vm0, %v2659_v58, 0.0  ;;  %v2629_v19 = vsub.f32 %v7418_v33, %v6813_v6  ;;  %v5676_v25 = vld [vmem:[%s7776_s0 + $0xd8] sm:$0xff]  ;;  %v7527_v53 = vpop.permute.xlu1 %4122 }
 0x162   :  { %v7499_v2 = vpop.f32.mrb[46].mxu1  ;;  %v3949_v1 = vsel %vm101_vm0, %v3893_v10, 0.0  ;;  %v3894_v8 = vmul.f32 %v3862_v56, %v3862_v56  ;;  %v2711_v42 = vadd.f32 %v2710_v29, %v2709_v18  ;;  %v2662_v16 = vmul.f32 %v2630_v17, %v2630_v17  ;;  %v3759_v56 = vpop.permute.xlu0 %3758 }
 0x163   :  { %v7506_v12 = vpop.f32.mrb[47].mxu1  ;;  %v2712_v36 = vsel %vm101_vm0, %v2660_v0, 0.0  ;;  %v3863_v45 = vmul.f32 %v5676_v25, %v3831_v55  ;;  %v2661_v63 = vmul.f32 %v2629_v19, %v2629_v19  ;;  %v3611_v43 = vcombine.high %v7930_v52, %v7930_v52 }
 0x164   :  { %v4335_v33 = vsel %vm101_vm0, %v4291_v37, 0.0  ;;  %v4292_v4 = vmul.f32 %v4260_v62, %v4260_v62  ;;  %v2713_v23 = vadd.f32 %v2712_v36, %v2711_v42  ;;  %v2632_v5 = vsub.f32 %v5174_v24, %v6785_v38 }
 0x165   :  { %v4230_v34 = vsub.f32 %v7478_v31, %v7398_v13  ;;  %v2716_v11 = vsel %vm101_vm0, %v2662_v16, 0.0  ;;  %v2714_v50 = vsel %vm101_vm0, %v2661_v63, 0.0  ;;  %v7522_v9 = vrot.slane %v3611_v43, %v6355_v26  ;;  %v7546_v25 = vpop.permute.xlu1 %4126 }
 0x166   :  { %v4261_v61 = vmul.f32 %v5677_v21, %v4229_v40  ;;  %v3950_v30 = vadd.f32 %v3949_v1, %v3948_v59  ;;  %v2715_v48 = vadd.f32 %v2714_v50, %v2713_v23  ;;  %v2631_v24 = vsub.f32 %v2503_v35, %v6789_v57  ;;  %v5679_v35 = vld [vmem:[%s7776_s0 + $0xe0] sm:$0xff] }
 0x167   :  { %v3951_v13 = vsel %vm101_vm0, %v3894_v8, 0.0  ;;  %v3895_v14 = vmul.f32 %v3863_v45, %v3863_v45  ;;  %v3832_v10 = vsub.f32 %v7522_v9, %v7465_v15  ;;  %v2664_v20 = vmul.f32 %v2632_v5, %v2632_v5  ;;  %v3763_v5 = vpop.permute.xlu0 %3762 }
 0x168   :  { %v4336_v0 = vadd.f32 %v4335_v33, %v4334_v46  ;;  %v4337_v58 = vsel %vm101_vm0, %v4292_v4, 0.0  ;;  %v2663_v18 = vmul.f32 %v2631_v24, %v2631_v24  ;;  %v2717_v37 = vadd.f32 %v2716_v11, %v2715_v48 }
 0x169   :  { %v4262_v62 = vmul.f32 %v5678_v51, %v4230_v34  ;;  %v3864_v55 = vmul.f32 %v5679_v35, %v3832_v10  ;;  %v3833_v17 = vsub.f32 %v7522_v9, %v3755_v3  ;;  %v2634_v15 = vsub.f32 %v5177_v44, %v6793_v28  ;;  %v5680_v44 = vld [vmem:[%s7776_s0 + $0xe8] sm:$0xff]  ;;  %v5681_v10 = vld [vmem:[%s7776_s0 + $0xf0] sm:$0xff] }
 0x16a   :  { %v4293_v40 = vmul.f32 %v4261_v61, %v4261_v61  ;;  %v3952_v46 = vadd.f32 %v3951_v13, %v3950_v30  ;;  %v2718_v59 = vsel %vm101_vm0, %v2663_v18, 0.0  ;;  %v2633_v29 = vsub.f32 %v2513_v27, %v6813_v6 }
 0x16b   :  { %v3953_v1 = vsel %vm101_vm0, %v3895_v14, 0.0  ;;  %v3896_v8 = vmul.f32 %v3864_v55, %v3864_v55  ;;  %v2720_v42 = vsel %vm101_vm0, %v2664_v20, 0.0  ;;  %v2719_v16 = vadd.f32 %v2718_v59, %v2717_v37 }
 0x16c   :  { %v5202_v19 = vpop.f32.mrb[48].mxu0  ;;  %v3865_v3 = vmul.f32 %v5680_v44, %v3833_v17  ;;  %v2666_v45 = vmul.f32 %v2634_v15, %v2634_v15  ;;  %v2665_v63 = vmul.f32 %v2633_v29, %v2633_v29  ;;  %v3834_v52 = vsub.f32 %v7522_v9, %v3759_v56  ;;  %v7591_v15 = vpop.permute.xlu1 %4130  ;;  %v5684_v44 = vld [vmem:[%s7777_s1 + $0x90] sm:$0xff] }
 0x16d   :  { %v2809_v36 = vpop.f32.mrb[49].mxu0  ;;  %v4338_v43 = vadd.f32 %v4337_v58, %v4336_v0  ;;  %v4294_v33 = vmul.f32 %v4262_v62, %v4262_v62  ;;  %v4231_v4 = vsub.f32 %v7478_v31, %v7432_v47  ;;  %v2721_v23 = vadd.f32 %v2720_v42, %v2719_v16 }
 0x16e   :  { %v7552_v27 = vpop.f32.mrb[48].mxu1  ;;  %v4339_v11 = vsel %vm101_vm0, %v4293_v40, 0.0  ;;  %v2724_v50 = vsel %vm101_vm0, %v2666_v45, 0.0  ;;  %v2722_v21 = vsel %vm101_vm0, %v2665_v63, 0.0  ;;  %v7565_v30 = vrot.slane %v3989_v60, %v6725_v7  ;;  %v5682_v60 = vld [vmem:[%s7777_s1 + $0x88] sm:$0xff] }
 0x16f   :  { %v7556_v34 = vpop.f32.mrb[49].mxu1  ;;  %v3954_v48 = vadd.f32 %v3953_v1, %v3952_v46  ;;  %v3955_v47 = vsel %vm101_vm0, %v3896_v8, 0.0  ;;  %v2723_v24 = vadd.f32 %v2722_v21, %v2721_v23  ;;  %v3897_v14 = vmul.f32 %v3865_v3, %v3865_v3 }
 0x170   :  { %v5205_v61 = vpop.f32.mrb[50].mxu0  ;;  %v3866_v20 = vmul.f32 %v5681_v10, %v3834_v52  ;;  %v2635_v56 = vsub.f32 %v7482_v39, %v6789_v57  ;;  %v3835_v0 = vsub.f32 %v7522_v9, %v3763_v5  ;;  %v4340_v7 = vadd.f32 %v4339_v11, %v4338_v43  ;;  %v5683_v9 = vld [vmem:[%s7776_s0 + $0xf8] sm:$0xff] }
 0x171   :  { %v2819_v13 = vpop.f32.mrb[51].mxu0  ;;  %v4341_v41 = vsel %vm101_vm0, %v4294_v33, 0.0  ;;  %v4263_v18 = vmul.f32 %v5682_v60, %v4231_v4  ;;  %v2725_v37 = vadd.f32 %v2724_v50, %v2723_v24  ;;  %v4232_v62 = vsub.f32 %v7478_v31, %v7454_v49  ;;  %v7609_v50 = vpop.permute.xlu1 %4134 }
 0x172   :  { %v7574_v58 = vpop.f32.mrb[50].mxu1  ;;  %v2636_v39 = vsub.f32 %v7474_v54, %v6785_v38  ;;  %v2667_v35 = vmul.f32 %v2635_v56, %v2635_v56  ;;  %v3867_v55 = vmul.f32 %v5683_v9, %v3835_v0  ;;  %v7589_v17 = vrot.slane %v7565_v30, %v6355_v26 }
 0x173   :  { %v2904_v51 = vpop.f32.mrb[51].mxu1  ;;  %v3956_v40 = vadd.f32 %v3955_v47, %v3954_v48  ;;  %v2637_v46 = vsub.f32 %v7506_v12, %v6813_v6  ;;  %v3957_v49 = vsel %vm101_vm0, %v3897_v14, 0.0  ;;  %v3898_v59 = vmul.f32 %v3866_v20, %v3866_v20 }
 0x174   :  { %v2726_v54 = vsel %vm101_vm0, %v2667_v35, 0.0  ;;  %v2638_v29 = vsub.f32 %v7499_v2, %v6793_v28  ;;  %v7599_v1 = vadd.f32 %v4341_v41, %v4340_v7  ;;  %v4295_v8 = vmul.f32 %v4263_v18, %v4263_v18 }
 0x175   :  { %v2727_v42 = vadd.f32 %v2726_v54, %v2725_v37  ;;  %v3899_v16 = vmul.f32 %v3867_v55, %v3867_v55  ;;  %v4264_v3 = vmul.f32 %v5684_v44, %v4232_v62  ;;  %v2668_v45 = vmul.f32 %v2636_v39, %v2636_v39  ;;  %v7630_v54 = vpop.permute.xlu1 %4141 }
 0x176   :  { %v3424_v12 = vsub.f32 %v5202_v19, %v6785_v38  ;;  %v3423_v63 = vsub.f32 %v2809_v36, %v6789_v57  ;;  %v2669_v52 = vmul.f32 %v2637_v46, %v2637_v46  ;;  %v3426_v43 = vsub.f32 %v5205_v61, %v6793_v28 }
 0x177   :  { %v3425_v2 = vsub.f32 %v2819_v13, %v6813_v6  ;;  %v3958_v33 = vadd.f32 %v3957_v49, %v3956_v40  ;;  %v2670_v4 = vmul.f32 %v2638_v29, %v2638_v29  ;;  %v3959_v11 = vsel %vm101_vm0, %v3898_v59, 0.0 }
 0x178   :  { %v3456_v23 = vmul.f32 %v3424_v12, %v3424_v12  ;;  %v3455_v5 = vmul.f32 %v3423_v63, %v3423_v63  ;;  %v3458_v21 = vmul.f32 %v3426_v43, %v3426_v43  ;;  %v3961_v19 = vsel %vm101_vm0, %v3899_v16, 0.0 }
 0x179   :  { %v3457_v48 = vmul.f32 %v3425_v2, %v3425_v2  ;;  %v3960_v47 = vadd.f32 %v3959_v11, %v3958_v33  ;;  %v2728_v36 = vsel %vm101_vm0, %v2668_v45, 0.0  ;;  %v3428_v13 = vsub.f32 %v7552_v27, %v6785_v38 }
 0x17a   :  { %v3488_v24 = vsel %vm101_vm0, %v3456_v23, 0.0  ;;  %v3487_v61 = vsel %vm101_vm0, %v3455_v5, 0.0  ;;  %v2730_v10 = vsel %vm101_vm0, %v2669_v52, 0.0  ;;  %v4233_v41 = vsub.f32 %v7478_v31, %v7493_v22 }
 0x17b   :  { %v3489_v20 = vadd.f32 %v3488_v24, %v3487_v61  ;;  %v3490_v56 = vsel %vm101_vm0, %v3457_v48, 0.0  ;;  %v3962_v0 = vadd.f32 %v3961_v19, %v3960_v47  ;;  %v3492_v60 = vsel %vm101_vm0, %v3458_v21, 0.0  ;;  %v5686_v48 = vld [vmem:[%s7777_s1 + $0xa0] sm:$0xff] }
 0x17c   :  { %v5230_v14 = vpop.f32.mrb[52].mxu0  ;;  %v2729_v18 = vadd.f32 %v2728_v36, %v2727_v42  ;;  %v3427_v37 = vsub.f32 %v7556_v34, %v6789_v57  ;;  %v3460_v27 = vmul.f32 %v3428_v13, %v3428_v13  ;;  %v2732_v35 = vsel %vm101_vm0, %v2670_v4, 0.0  ;;  %v7649_v36 = vpop.permute.xlu1 %4145 }
 0x17d   :  { %v2979_v7 = vpop.f32.mrb[53].mxu0  ;;  %v3491_v39 = vadd.f32 %v3490_v56, %v3489_v20  ;;  %3963 = vadd.xlane.f32.xlu1 %v3962_v0  ;;  %v3429_v9 = vsub.f32 %v2904_v51, %v6813_v6  ;;  %v3430_v31 = vsub.f32 %v7574_v58, %v6793_v28  ;;  %v4343_v59 = vsel %vm101_vm0, %v4295_v8, 0.0  ;;  %v5685_v51 = vld [vmem:[%s7777_s1 + $0x98] sm:$0xff] }
 0x17e   :  { %v5244_v62 = vpop.f32.mrb[52].mxu1  ;;  %v2731_v40 = vadd.f32 %v2730_v10, %v2729_v18  ;;  %v3459_v46 = vmul.f32 %v3427_v37, %v3427_v37  ;;  %v3431_v22 = vsub.f32 %v2979_v7, %v6789_v57  ;;  %v4296_v34 = vmul.f32 %v4264_v3, %v4264_v3 }
 0x17f   :  { %v3064_v55 = vpop.f32.mrb[53].mxu1  ;;  %v3493_v29 = vadd.f32 %v3492_v60, %v3491_v39  ;;  %v3461_v42 = vmul.f32 %v3429_v9, %v3429_v9  ;;  %v4265_v44 = vmul.f32 %v5685_v51, %v4233_v41  ;;  %v4234_v45 = vsub.f32 %v7589_v17, %v7527_v53  ;;  %v5687_v60 = vld [vmem:[%s7777_s1 + $0xa8] sm:$0xff] }
 0x180   :  { %v5233_v49 = vpop.f32.mrb[54].mxu0  ;;  %v2733_v58 = vadd.f32 %v2732_v35, %v2731_v40  ;;  %v3494_v12 = vsel %vm101_vm0, %v3459_v46, 0.0  ;;  %v3496_v8 = vsel %vm101_vm0, %v3460_v27, 0.0  ;;  %v3432_v52 = vsub.f32 %v5230_v14, %v6785_v38 }
 0x181   :  { %v2989_v16 = vpop.f32.mrb[55].mxu0  ;;  %v3495_v3 = vadd.f32 %v3494_v12, %v3493_v29  ;;  %v3462_v2 = vmul.f32 %v3430_v31, %v3430_v31  ;;  %v3498_v33 = vsel %vm101_vm0, %v3461_v42, 0.0  ;;  %v3463_v4 = vmul.f32 %v3431_v22, %v3431_v22  ;;  %v5688_v42 = vld [vmem:[%s7777_s1 + $0xb0] sm:$0xff] }
 0x182   :  { %v5247_v63 = vpop.f32.mrb[54].mxu1  ;;  %2734 = vadd.xlane.f32.xlu0 %v2733_v58  ;;  %v3433_v23 = vsub.f32 %v2989_v16, %v6813_v6  ;;  %v4344_v5 = vadd.f32 %v4343_v59, %v7599_v1  ;;  %v4345_v11 = vsel %vm101_vm0, %v4296_v34, 0.0  ;;  %v4297_v21 = vmul.f32 %v4265_v44, %v4265_v44 }
 0x183   :  { %v3074_v43 = vpop.f32.mrb[55].mxu1  ;;  %v3497_v53 = vadd.f32 %v3496_v8, %v3495_v3  ;;  %v4266_v47 = vmul.f32 %v5686_v48, %v4234_v45  ;;  %v4235_v19 = vsub.f32 %v7589_v17, %v7546_v25  ;;  %v3464_v61 = vmul.f32 %v3432_v52, %v3432_v52 }
 0x184   :  { %v3434_v13 = vsub.f32 %v5233_v49, %v6793_v28  ;;  %v3500_v1 = vsel %vm101_vm0, %v3462_v2, 0.0  ;;  %v3502_v14 = vsel %vm101_vm0, %v3463_v4, 0.0  ;;  %v3465_v10 = vmul.f32 %v3433_v23, %v3433_v23  ;;  %v7670_v49 = vpop.permute.xlu1 %4149 }
 0x185   :  { %v3499_v24 = vadd.f32 %v3498_v33, %v3497_v53  ;;  %v3435_v20 = vsub.f32 %v3064_v55, %v6789_v57  ;;  %v4346_v56 = vadd.f32 %v4345_v11, %v4344_v5  ;;  %v4019_v0 = vcombine.high %v7437_v32, %v7437_v32 }
 0x186   :  { %v4347_v25 = vsel %vm101_vm0, %v4297_v21, 0.0  ;;  %v4298_v41 = vmul.f32 %v4266_v47, %v4266_v47  ;;  %v4267_v18 = vmul.f32 %v5687_v60, %v4235_v19  ;;  %v4236_v37 = vsub.f32 %v7589_v17, %v7591_v15 }
 0x187   :  { %v3501_v7 = vadd.f32 %v3500_v1, %v3499_v24  ;;  %v3504_v39 = vsel %vm101_vm0, %v3464_v61, 0.0  ;;  %v3466_v35 = vmul.f32 %v3434_v13, %v3434_v13  ;;  %v3506_v9 = vsel %vm101_vm0, %v3465_v10, 0.0  ;;  %v5690_v10 = vld [vmem:[%s7777_s1 + $0xc0] sm:$0xff] }
 0x188   :  { %v3436_v32 = vsub.f32 %v5244_v62, %v6785_v38  ;;  %v3467_v55 = vmul.f32 %v3435_v20, %v3435_v20  ;;  %v3437_v40 = vsub.f32 %v3074_v43, %v6813_v6  ;;  %v4348_v31 = vadd.f32 %v4347_v25, %v4346_v56  ;;  %v7688_v21 = vpop.permute.xlu1 %4153 }
 0x189   :  { %v3503_v27 = vadd.f32 %v3502_v14, %v3501_v7  ;;  %v7668_v22 = vrot.slane %v4019_v0, %v6355_v26  ;;  %v4349_v34 = vsel %vm101_vm0, %v4298_v41, 0.0  ;;  %v4299_v29 = vmul.f32 %v4267_v18, %v4267_v18 }
 0x18a   :  { %v4268_v62 = vmul.f32 %v5688_v42, %v4236_v37  ;;  %v4237_v16 = vsub.f32 %v7589_v17, %v7609_v50  ;;  %v3508_v44 = vsel %vm101_vm0, %v3466_v35, 0.0  ;;  %v3438_v58 = vsub.f32 %v5247_v63, %v6793_v28  ;;  %v5689_v63 = vld [vmem:[%s7777_s1 + $0xb8] sm:$0xff] }
 0x18b   :  { %v3505_v59 = vadd.f32 %v3504_v39, %v3503_v27  ;;  %v3468_v8 = vmul.f32 %v3436_v32, %v3436_v32  ;;  %v3510_v3 = vsel %vm101_vm0, %v3467_v55, 0.0  ;;  %v3469_v52 = vmul.f32 %v3437_v40, %v3437_v40 }
 0x18c   :  { %v5258_v46 = vpop.f32.mrb[56].mxu0  ;;  %v4350_v33 = vadd.f32 %v4349_v34, %v4348_v31  ;;  %v4238_v4 = vsub.f32 %v7668_v22, %v7630_v54  ;;  %v4351_v50 = vsel %vm101_vm0, %v4299_v29, 0.0  ;;  %v4300_v5 = vmul.f32 %v4268_v62, %v4268_v62  ;;  %v4161_v55 = vpop.permute.xlu1 %4160 }
 0x18d   :  { %v3149_v15 = vpop.f32.mrb[57].mxu0  ;;  %v3507_v45 = vadd.f32 %v3506_v9, %v3505_v59  ;;  %v4269_v53 = vmul.f32 %v5689_v63, %v4237_v16  ;;  %v3470_v47 = vmul.f32 %v3438_v58, %v3438_v58  ;;  %v3440_v19 = vsub.f32 %v5258_v46, %v6785_v38 }
 0x18e   :  { %v5272_v51 = vpop.f32.mrb[56].mxu1  ;;  %v3439_v43 = vsub.f32 %v3149_v15, %v6789_v57  ;;  %v3512_v54 = vsel %vm101_vm0, %v3468_v8, 0.0  ;;  %v3514_v61 = vsel %vm101_vm0, %v3469_v52, 0.0  ;;  %v4352_v14 = vadd.f32 %v4351_v50, %v4350_v33 }
 0x18f   :  { %v3234_v12 = vpop.f32.mrb[57].mxu1  ;;  %v3509_v23 = vadd.f32 %v3508_v44, %v3507_v45  ;;  %v4270_v20 = vmul.f32 %v5690_v10, %v4238_v4  ;;  %v4353_v0 = vsel %vm101_vm0, %v4300_v5, 0.0  ;;  %v4301_v7 = vmul.f32 %v4269_v53, %v4269_v53 }
 0x190   :  { %v5261_v2 = vpop.f32.mrb[58].mxu0  ;;  %v3471_v13 = vmul.f32 %v3439_v43, %v3439_v43  ;;  %v4239_v25 = vsub.f32 %v7668_v22, %v7649_v36  ;;  %v3516_v41 = vsel %vm101_vm0, %v3470_v47, 0.0  ;;  %v3472_v18 = vmul.f32 %v3440_v19, %v3440_v19  ;;  %v5691_v36 = vld [vmem:[%s7777_s1 + $0xc8] sm:$0xff]  ;;  %v4165_v4 = vpop.permute.xlu1 %4164 }
 0x191   :  { %v3159_v17 = vpop.f32.mrb[59].mxu0  ;;  %v3511_v48 = vadd.f32 %v3510_v3, %v3509_v23  ;;  %v3442_v39 = vsub.f32 %v5261_v2, %v6793_v28  ;;  %v3443_v35 = vsub.f32 %v3234_v12, %v6789_v57  ;;  %v4354_v9 = vadd.f32 %v4353_v0, %v4352_v14 }
 0x192   :  { %v5275_v11 = vpop.f32.mrb[58].mxu1  ;;  %v3441_v1 = vsub.f32 %v3159_v17, %v6813_v6  ;;  %v3518_v37 = vsel %vm101_vm0, %v3471_v13, 0.0  ;;  %v4302_v32 = vmul.f32 %v4270_v20, %v4270_v20  ;;  %v4355_v46 = vsel %vm101_vm0, %v4301_v7, 0.0 }
 0x193   :  { %v3244_v24 = vpop.f32.mrb[59].mxu1  ;;  %v3513_v56 = vadd.f32 %v3512_v54, %v3511_v48  ;;  %v4271_v31 = vmul.f32 %v5691_v36, %v4239_v25  ;;  %v4240_v59 = vsub.f32 %v7668_v22, %v7670_v49  ;;  %v4021_v15 = vcombine.high %v7565_v30, %v7565_v30  ;;  %v5692_v30 = vld [vmem:[%s7777_s1 + $0xd0] sm:$0xff] }
 0x194   :  { %v3473_v27 = vmul.f32 %v3441_v1, %v3441_v1  ;;  %v3520_v34 = vsel %vm101_vm0, %v3472_v18, 0.0  ;;  %v3444_v42 = vsub.f32 %v5272_v51, %v6785_v38  ;;  %v3474_v62 = vmul.f32 %v3442_v39, %v3442_v39  ;;  %v4169_v18 = vpop.permute.xlu1 %4168 }
 0x195   :  { %v3515_v60 = vadd.f32 %v3514_v61, %v3513_v56  ;;  %v3475_v44 = vmul.f32 %v3443_v35, %v3443_v35  ;;  %v3445_v45 = vsub.f32 %v3244_v24, %v6813_v6  ;;  %v4356_v12 = vadd.f32 %v4355_v46, %v4354_v9  ;;  %v5693_v61 = vld [vmem:[%s7777_s1 + $0xd8] sm:$0xff]  ;;  %v5694_v35 = vld [vmem:[%s7777_s1 + $0xe0] sm:$0xff] }
 0x196   :  { %v3522_v16 = vsel %vm101_vm0, %v3473_v27, 0.0  ;;  %v4357_v8 = vsel %vm101_vm0, %v4302_v32, 0.0  ;;  %v4303_v52 = vmul.f32 %v4271_v31, %v4271_v31  ;;  %v4272_v43 = vmul.f32 %v5692_v30, %v4240_v59 }
 0x197   :  { %v3517_v40 = vadd.f32 %v3516_v41, %v3515_v60  ;;  %v4241_v51 = vsub.f32 %v7668_v22, %v7688_v21  ;;  %v7723_v2 = vrot.slane %v4021_v15, %v6355_v26  ;;  %v3476_v17 = vmul.f32 %v3444_v42, %v3444_v42 }
 0x198   :  { %v3446_v50 = vsub.f32 %v5275_v11, %v6793_v28  ;;  %v3524_v63 = vsel %vm101_vm0, %v3474_v62, 0.0  ;;  %v3526_v53 = vsel %vm101_vm0, %v3475_v44, 0.0  ;;  %v3477_v48 = vmul.f32 %v3445_v45, %v3445_v45 }
 0x199   :  { %v3519_v29 = vadd.f32 %v3518_v37, %v3517_v40  ;;  %v4358_v24 = vadd.f32 %v4357_v8, %v4356_v12  ;;  %v4359_v26 = vsel %vm101_vm0, %v4303_v52, 0.0  ;;  %v4304_v54 = vmul.f32 %v4272_v43, %v4272_v43 }
 0x19a   :  { %v4273_v11 = vmul.f32 %v5693_v61, %v4241_v51  ;;  %v4242_v13 = vsub.f32 %v7723_v2, %v4161_v55  ;;  %v3478_v10 = vmul.f32 %v3446_v50, %v3446_v50  ;;  %v3528_v0 = vsel %vm101_vm0, %v3476_v17, 0.0  ;;  %v5696_v17 = vld [vmem:[%s7777_s1 + $0xf0] sm:$0xff] }
 0x19b   :  { %v3521_v3 = vadd.f32 %v3520_v34, %v3519_v29  ;;  %v3530_v7 = vsel %vm101_vm0, %v3477_v48, 0.0  ;;  %v4360_v60 = vadd.f32 %v4359_v26, %v4358_v24  ;;  %v4361_v39 = vsel %vm101_vm0, %v4304_v54, 0.0 }
 0x19c   :  { %v5286_v58 = vpop.f32.mrb[60].mxu0  ;;  %v4305_v27 = vmul.f32 %v4273_v11, %v4273_v11  ;;  %v4274_v9 = vmul.f32 %v5694_v35, %v4242_v13  ;;  %v4243_v32 = vsub.f32 %v7723_v2, %v4165_v4  ;;  %v3532_v55 = vsel %vm101_vm0, %v3478_v10, 0.0 }
 0x19d   :  { %v3319_v49 = vpop.f32.mrb[61].mxu0  ;;  %v3523_v23 = vadd.f32 %v3522_v16, %v3521_v3  ;;  %v3448_v20 = vsub.f32 %v5286_v58, %v6785_v38  ;;  %v4362_v34 = vadd.f32 %v4361_v39, %v4360_v60  ;;  %v5695_v16 = vld [vmem:[%s7777_s1 + $0xe8] sm:$0xff]  ;;  %v4244_v45 = vsub.f32 %v7723_v2, %v4169_v18  ;;  %v4173_v58 = vpop.permute.xlu1 %4172 }
 0x19e   :  { %v5300_v33 = vpop.f32.mrb[60].mxu1  ;;  %v3447_v47 = vsub.f32 %v3319_v49, %v6789_v57  ;;  %v4363_v42 = vsel %vm101_vm0, %v4305_v27, 0.0  ;;  %v4306_v62 = vmul.f32 %v4274_v9, %v4274_v9  ;;  %v4275_v44 = vmul.f32 %v5695_v16, %v4243_v32 }
 0x19f   :  { %v3404_v5 = vpop.f32.mrb[61].mxu1  ;;  %v3525_v22 = vadd.f32 %v3524_v63, %v3523_v23  ;;  %v3480_v46 = vmul.f32 %v3448_v20, %v3448_v20  ;;  %v3452_v3 = vsub.f32 %v5300_v33, %v6785_v38  ;;  %v4364_v43 = vadd.f32 %v4363_v42, %v4362_v34 }
 0x1a0   :  { %v5289_v19 = vpop.f32.mrb[62].mxu0  ;;  %v3479_v25 = vmul.f32 %v3447_v47, %v3447_v47  ;;  %v3451_v15 = vsub.f32 %v3404_v5, %v6789_v57  ;;  %v4365_v4 = vsel %vm101_vm0, %v4306_v62, 0.0  ;;  %v4307_v23 = vmul.f32 %v4275_v44, %v4275_v44 }
 0x1a1   :  { %v3329_v21 = vpop.f32.mrb[63].mxu0  ;;  %v3527_v14 = vadd.f32 %v3526_v53, %v3525_v22  ;;  %v3450_v31 = vsub.f32 %v5289_v19, %v6793_v28  ;;  %v3536_v12 = vsel %vm101_vm0, %v3480_v46, 0.0  ;;  %v4276_v50 = vmul.f32 %v5696_v17, %v4244_v45 }
 0x1a2   :  { %v5303_v1 = vpop.f32.mrb[62].mxu1  ;;  %v3449_v41 = vsub.f32 %v3329_v21, %v6813_v6  ;;  %v3534_v36 = vsel %vm101_vm0, %v3479_v25, 0.0  ;;  %v3483_v52 = vmul.f32 %v3451_v15, %v3451_v15  ;;  %v4245_v5 = vsub.f32 %v7723_v2, %v4173_v58  ;;  %v5697_v21 = vld [vmem:[%s7777_s1 + $0xf8] sm:$0xff] }
 0x1a3   :  { %v3414_v56 = vpop.f32.mrb[63].mxu1  ;;  %v3529_v37 = vadd.f32 %v3528_v0, %v3527_v14  ;;  %v3482_v49 = vmul.f32 %v3450_v31, %v3450_v31  ;;  %v3484_v38 = vmul.f32 %v3452_v3, %v3452_v3  ;;  %v4366_v47 = vadd.f32 %v4365_v4, %v4364_v43 }
 0x1a4   :  { %v3481_v59 = vmul.f32 %v3449_v41, %v3449_v41  ;;  %v3453_v30 = vsub.f32 %v3414_v56, %v6813_v6  ;;  %v3542_v53 = vsel %vm101_vm0, %v3483_v52, 0.0  ;;  %v3454_v6 = vsub.f32 %v5303_v1, %v6793_v28 }
 0x1a5   :  { %v3531_v40 = vadd.f32 %v3530_v7, %v3529_v37  ;;  %v3540_v33 = vsel %vm101_vm0, %v3482_v49, 0.0  ;;  %v4367_v24 = vsel %vm101_vm0, %v4307_v23, 0.0  ;;  %v4308_v22 = vmul.f32 %v4276_v50, %v4276_v50 }
 0x1a6   :  { %v3538_v57 = vsel %vm101_vm0, %v3481_v59, 0.0  ;;  %v3485_v48 = vmul.f32 %v3453_v30, %v3453_v30  ;;  %v4277_v26 = vmul.f32 %v5697_v21, %v4245_v5  ;;  %v3544_v54 = vsel %vm101_vm0, %v3484_v38, 0.0 }
 0x1a7   :  { %v3533_v29 = vadd.f32 %v3532_v55, %v3531_v40  ;;  %v3486_v61 = vmul.f32 %v3454_v6, %v3454_v6  ;;  %v4368_v14 = vadd.f32 %v4367_v24, %v4366_v47  ;;  %v4369_v1 = vsel %vm101_vm0, %v4308_v22, 0.0 }
 0x1a8   :  { %v3546_v11 = vsel %vm101_vm0, %v3485_v48, 0.0  ;;  %v4309_v28 = vmul.f32 %v4277_v26, %v4277_v26 }
 0x1a9   :  { %v3535_v8 = vadd.f32 %v3534_v36, %v3533_v29  ;;  %v3548_v20 = vsel %vm101_vm0, %v3486_v61, 0.0  ;;  %v4370_v25 = vadd.f32 %v4369_v1, %v4368_v14 }
 0x1aa   :  { %v4371_v41 = vsel %vm101_vm0, %v4309_v28, 0.0 }
 0x1ab   :  { %v3537_v51 = vadd.f32 %v3536_v12, %v3535_v8  ;;  %v4372_v37 = vadd.f32 %v4371_v41, %v4370_v25 }
 0x1ad   :  { %v3539_v63 = vadd.f32 %v3538_v57, %v3537_v51 }
 0x1af   :  { %v3541_v19 = vadd.f32 %v3540_v33, %v3539_v63 }
 0x1b1   :  { %v3543_v2 = vadd.f32 %v3542_v53, %v3541_v19 }
 0x1b3   :  { %v3545_v13 = vadd.f32 %v3544_v54, %v3543_v2 }
 0x1b5   :  { %v3547_v10 = vadd.f32 %v3546_v11, %v3545_v13 }
 0x1b6   :  { %v1006_v56 = vpop.xlane.xlu0 %1005 }
 0x1b7   :  { %v3549_v0 = vadd.f32 %v3548_v20, %v3547_v10  ;;  %v1007_v7 = vrot.slane %v1006_v56, 4 }
 0x1b9   :  { %3550 = vadd.xlane.f32.xlu0 %v3549_v0  ;;  %v1008_v60 = vadd.f32 %v1007_v7, %v1006_v56 }
 0x1bb   :  { %v1009_v18 = vrot.slane %v1008_v60, 2 }
 0x1bd   :  { %4373 = vadd.xlane.f32.xlu0 %v4372_v37  ;;  %v1010_v39 = vadd.f32 %v1009_v18, %v1008_v60 }
 0x1bf   :  { %v1011_v27 = vrot.slane %v1010_v39, 1 }
 0x1c1   :  { %v1012_v35 = vadd.f32 %v1011_v27, %v1010_v39 }
 0x1c3   :  { %5624 = vpush %v1012_v35 }
 0x1e2   :  { %v1918_v9 = vpop.xlane.xlu1 %1917 }
 0x1e3   :  { %v1919_v32 = vrot.slane %v1918_v9, 4 }
 0x1e5   :  { %v1920_v55 = vadd.f32 %v1919_v32, %v1918_v9 }
 0x1e7   :  { %v1921_v40 = vrot.slane %v1920_v55, 2 }
 0x1e9   :  { %v1922_v46 = vadd.f32 %v1921_v40, %v1920_v55 }
 0x1eb   :  { %v1923_v36 = vrot.slane %v1922_v46, 1 }
 0x1ed   :  { %v1924_v31 = vadd.f32 %v1923_v36, %v1922_v46 }
 0x1ef   :  { %5626 = vpush %v1924_v31 }
 0x1f4   :  { %s5625_s1 = spop %5624 }
 0x20a   :  { %v3964_v44 = vpop.xlane.xlu1 %3963 }
 0x20b   :  { %v3965_v45 = vrot.slane %v3964_v44, 4 }
 0x20d   :  { %v3966_v58 = vadd.f32 %v3965_v45, %v3964_v44 }
 0x20f   :  { %v2735_v59 = vpop.xlane.xlu0 %2734  ;;  %v3967_v12 = vrot.slane %v3966_v58, 2 }
 0x210   :  { %v2736_v15 = vrot.slane %v2735_v59, 4 }
 0x211   :  { %v3968_v57 = vadd.f32 %v3967_v12, %v3966_v58 }
 0x212   :  { %v2737_v34 = vadd.f32 %v2736_v15, %v2735_v59 }
 0x213   :  { %v3969_v23 = vrot.slane %v3968_v57, 1 }
 0x214   :  { %v2738_v29 = vrot.slane %v2737_v34, 2 }
 0x215   :  { %v3970_v38 = vadd.f32 %v3969_v23, %v3968_v57 }
 0x216   :  { %v2739_v42 = vadd.f32 %v2738_v29, %v2737_v34 }
 0x218   :  { %v2740_v62 = vrot.slane %v2739_v42, 1 }
 0x21a   :  { %v2741_v16 = vadd.f32 %v2740_v62, %v2739_v42 }
 0x21c   :  { %5628 = vpush %v2741_v16 }
 0x220   :  { %s5627_s3 = spop %5626 }
 0x221   :  { %s1926_s0 = sadd.f32 %s5627_s3, %s5625_s1 }
 0x223   :  { %4384 = sst [smem:[#allocation2]] %s1926_s0 }
 0x246   :  { %v3551_v8 = vpop.xlane.xlu0 %3550 }
 0x247   :  { %v3552_v3 = vrot.slane %v3551_v8, 4 }
 0x249   :  { %v3553_v49 = vadd.f32 %v3552_v3, %v3551_v8 }
 0x24a   :  { %v4374_v52 = vpop.xlane.xlu0 %4373 }
 0x24b   :  { %v3554_v30 = vrot.slane %v3553_v49, 2  ;;  %v4375_v43 = vrot.slane %v4374_v52, 4 }
 0x24d   :  { %v4376_v51 = vadd.f32 %v4375_v43, %v4374_v52  ;;  %v3555_v4 = vadd.f32 %v3554_v30, %v3553_v49  ;;  %s5629_s17 = spop %5628 }
 0x24f   :  { %v4377_v17 = vrot.slane %v4376_v51, 2  ;;  %v3556_v50 = vrot.slane %v3555_v4, 1 }
 0x251   :  { %v4378_v5 = vadd.f32 %v4377_v17, %v4376_v51  ;;  %v3557_v63 = vadd.f32 %v3556_v50, %v3555_v4 }
 0x253   :  { %5630 = vpush %v3557_v63  ;;  %v4379_v33 = vrot.slane %v4378_v5, 1 }
 0x254   :  { %5632 = vpush %v3970_v38 }
 0x255   :  { %v4380_v53 = vadd.f32 %v4379_v33, %v4378_v5 }
 0x257   :  { %5634 = vpush %v4380_v53 }
 0x284   :  { %s5631_s18 = spop %5630 }
 0x285   :  { %s3559_s19 = sadd.f32 %s5631_s18, %s5629_s17  ;;  %s5633_s23 = spop %5632 }
 0x287   :  { %4386 = sst [smem:[#allocation2 + $0x1]] %s3559_s19 }
 0x288   :  { %s5635_s24 = spop %5634 }
 0x289   :  { %s4382_s25 = sadd.f32 %s5635_s24, %s5633_s23 }
 0x28b   :  { %4388 = sst [smem:[#allocation2 + $0x2]] %s4382_s25 }
 0x28c   :  { %5709 = shalt.err (!%p5706_p4)
}
 0x28d   :  { %s5714_s27 = smov [#allocation2]  }
 0x28e   :  { %4398 = dma.smem_to_vmem %s5714_s27, 16, %s4396_s22, [#allocation3]  }
 0x28f   :  { %5710 = dma.done.wait [#allocation3], 16  }
 0x290   :  { %5711 = vsyncadd [#allocation3], 4294967280 }
 0x291   :  { %4402 = sfence }
 0x292   :  { %4403 = vsyncpa [#allocation3], 1 }

</bundles_post_ra>
